<compile_context>
chip_gen: v5e
topology: v5e:2x2
jax: 0.10.0
libtpu: 0.0.40
codegen_flags: <defaults>
</compile_context>

<pallas_src>
import functools
import itertools

import numpy as np
import jax
import jax.numpy as jnp
from jax.experimental import pallas as pl
from jax.experimental.pallas import tpu as pltpu

_EPS = 1e-12       # guards 0/0 in degenerate (zero-area / padded) boxes
_M_BUCKET = 128    # matched-pair padding bucket (lane-dense, avoids recompiles)


# ----------------------------------------------------------------------------
# Kernel 1: classification NLL + cardinality partials (hot, batch-tiled grid)
# ----------------------------------------------------------------------------
def _cls_card_kernel(logits_ref,      # VMEM (TB, Q, K)
                     tcls_ref,        # VMEM (TB, Q, 1) int32
                     tlen_ref,        # VMEM (TB, 1, 1) f32 target lengths
                     out_ref,         # SMEM (1, 1, 8) f32 partial sums
                     *, eos_coef, num_classes):
    logits = logits_ref[...].astype(jnp.float32)                 # (TB, Q, K)
    tb, q, k = logits.shape
    tcls = tcls_ref[...]                                         # (TB, Q, 1)
    kio = jax.lax.broadcasted_iota(jnp.int32, (tb, q, k), 2)

    # --- weighted NLL (cross entropy): picked-logit + LSE, no logp tensor ---
    m = jnp.max(logits, axis=-1, keepdims=True)                  # row max (reused)
    lse = jnp.log(jnp.sum(jnp.exp(logits - m), axis=-1, keepdims=True)) + m
    picked = jnp.sum(jnp.where(kio == tcls, logits, 0.0),
                     axis=-1, keepdims=True)                     # (TB, Q, 1)
    nll = lse - picked
    # default DETR empty_weight: 1 everywhere, eos_coef at the no-object class
    wi = jnp.where(tcls == num_classes, eos_coef, 1.0).astype(jnp.float32)
    out_ref[0, 0, 0] = jnp.sum(wi * nll)                         # sum w*nll
    out_ref[0, 0, 1] = jnp.sum(wi)                               # sum w

    # --- cardinality: argmax != no-object.  Static lane slice of the
    # no-object logit vs the row max already computed above (saves a masked
    # XLU reduce).  Exact float ties with the no-object logit count as empty
    # (measure-zero deviation from torch argmax).
    noobj = logits[:, :, num_classes:num_classes + 1]            # (TB, Q, 1)
    not_empty = (noobj < m).astype(jnp.float32)
    card = jnp.sum(not_empty, axis=1, keepdims=True)             # (TB, 1, 1)
    tlen = tlen_ref[...]                                         # (TB, 1, 1)
    out_ref[0, 0, 2] = jnp.sum(jnp.abs(card - tlen))

    out_ref[0, 0, 3] = 0.0
    out_ref[0, 0, 4] = 0.0
    out_ref[0, 0, 5] = 0.0
    out_ref[0, 0, 6] = 0.0
    out_ref[0, 0, 7] = 0.0


# ----------------------------------------------------------------------------
# Kernel 2: matched-pair epilogue (bbox L1, GIoU, class_error) — cold, tiny
# ----------------------------------------------------------------------------
def _matched_epilogue_kernel(scal_ref,     # SMEM (8,) f32:
                             #   [0]=num matched (float), [1]=1/num_boxes,
                             #   [2]=1/max(num_matched,1)
                             boxes_ref,    # VMEM (8, Mp): rows 0..3 src cxcywh,
                             #                             rows 4..7 tgt cxcywh
                             mlog_ref,     # VMEM (Mp, K) matched logits
                             mlab_ref,     # VMEM (Mp, 1) matched labels int32
                             out_ref):     # SMEM (1, 8) f32
    m_valid = scal_ref[0]
    inv_num_boxes = scal_ref[1]
    inv_matched = scal_ref[2]

    boxes = boxes_ref[...].astype(jnp.float32)                   # (8, Mp)
    mp = boxes.shape[1]
    lane = jax.lax.broadcasted_iota(jnp.int32, (1, mp), 1).astype(jnp.float32)
    valid = (lane < m_valid).astype(jnp.float32)                 # (1, Mp)

    src = boxes[0:4, :]
    tgt = boxes[4:8, :]
    out_ref[0, 2] = jnp.sum(jnp.abs(src - tgt) * valid) * inv_num_boxes  # loss_bbox

    s_cx, s_cy, s_w, s_h = boxes[0:1], boxes[1:2], boxes[2:3], boxes[3:4]
    t_cx, t_cy, t_w, t_h = boxes[4:5], boxes[5:6], boxes[6:7], boxes[7:8]
    sx0 = s_cx - 0.5 * s_w; sy0 = s_cy - 0.5 * s_h
    sx1 = s_cx + 0.5 * s_w; sy1 = s_cy + 0.5 * s_h
    tx0 = t_cx - 0.5 * t_w; ty0 = t_cy - 0.5 * t_h
    tx1 = t_cx + 0.5 * t_w; ty1 = t_cy + 0.5 * t_h
    area_s = s_w * s_h
    area_t = t_w * t_h
    ix0 = jnp.maximum(sx0, tx0); iy0 = jnp.maximum(sy0, ty0)
    ix1 = jnp.minimum(sx1, tx1); iy1 = jnp.minimum(sy1, ty1)
    inter = jnp.maximum(ix1 - ix0, 0.0) * jnp.maximum(iy1 - iy0, 0.0)
    union = area_s + area_t - inter
    iou = inter / (union + _EPS)
    cx0 = jnp.minimum(sx0, tx0); cy0 = jnp.minimum(sy0, ty0)
    cx1 = jnp.maximum(sx1, tx1); cy1 = jnp.maximum(sy1, ty1)
    area_c = jnp.maximum(cx1 - cx0, 0.0) * jnp.maximum(cy1 - cy0, 0.0)
    giou = iou - (area_c - union) / (area_c + _EPS)
    out_ref[0, 3] = jnp.sum((1.0 - giou) * valid) * inv_num_boxes        # loss_giou

    # class_error: top-1 accuracy of matched predictions
    # (ties with the max count as correct; differs from torch topk only on ties)
    mlog = mlog_ref[...].astype(jnp.float32)                     # (Mp, K)
    mlab = mlab_ref[...]                                         # (Mp, 1)
    mm, kk = mlog.shape
    kio = jax.lax.broadcasted_iota(jnp.int32, (mm, kk), 1)
    lbl = jnp.sum(jnp.where(kio == mlab, mlog, 0.0), axis=-1, keepdims=True)
    mx = jnp.max(mlog, axis=-1, keepdims=True)
    row = jax.lax.broadcasted_iota(jnp.int32, (mm, 1), 0).astype(jnp.float32)
    validr = (row < m_valid).astype(jnp.float32)
    correct = jnp.sum((lbl >= mx).astype(jnp.float32) * validr)
    out_ref[0, 4] = 100.0 - correct * 100.0 * inv_matched        # class_error

    out_ref[0, 0] = 0.0
    out_ref[0, 1] = 0.0
    out_ref[0, 5] = 0.0
    out_ref[0, 6] = 0.0
    out_ref[0, 7] = 0.0


# ----------------------------------------------------------------------------
# Device-side fused losses (jitted once per shape signature)
# ----------------------------------------------------------------------------
def _pick_batch_tile(b, q, k, budget_bytes=8 << 20):
    """Largest divisor of B whose double-buffered streamed block fits budget.
    Budget kept well under v7x's 64 MiB physical / 32 MiB scoped VMEM."""
    lane_k = ((k + 127) // 128) * 128            # logits lane padding
    row_bytes = q * (lane_k + 128) * 4           # logits + lane-padded int32 tcls
    best = 1
    for tb in range(1, b + 1):
        if b % tb == 0 and 2 * tb * row_bytes <= budget_bytes:
            best = tb
    # TODO(synk): if even one batch row exceeds the budget (huge Q*K), tile Q
    # as a second grid axis instead of falling back to TB=1.
    return best


@functools.partial(jax.jit,
                   static_argnames=("eos_coef", "num_classes", "batch_tile"))
def _fused_losses(pred_logits, target_classes, tgt_len, boxes_packed,
                  matched_logits, matched_labels, scalars,
                  eos_coef, num_classes, batch_tile):
    b, q, k = pred_logits.shape
    tb = batch_tile
    n_bt = b // tb
    mp = boxes_packed.shape[1]

    # --- hot loop: classification + cardinality partials, parallel batch axis
    kern1 = functools.partial(_cls_card_kernel,
                              eos_coef=float(eos_coef),
                              num_classes=int(num_classes))
    partials = pl.pallas_call(
        kern1,
        grid=(n_bt,),
        in_specs=[
            pl.BlockSpec((tb, q, k), lambda i: (i, 0, 0)),
            pl.BlockSpec((tb, q, 1), lambda i: (i, 0, 0)),
            pl.BlockSpec((tb, 1, 1), lambda i: (i, 0, 0)),
        ],
        out_specs=pl.BlockSpec((1, 1, 8), lambda i: (i, 0, 0),
                               memory_space=pltpu.MemorySpace.SMEM),
        out_shape=jax.ShapeDtypeStruct((n_bt, 1, 8), jnp.float32),
        compiler_params=pltpu.CompilerParams(
            dimension_semantics=("parallel",),        # megacore-shardable (v7x)
            vmem_limit_bytes=32 * 1024 * 1024),
    )(pred_logits, target_classes, tgt_len)

    # --- cold epilogue: matched boxes + class_error, runtime scalars in SMEM
    epi = pl.pallas_call(
        _matched_epilogue_kernel,
        grid=(1,),
        in_specs=[
            pl.BlockSpec(memory_space=pltpu.MemorySpace.SMEM),   # scalars (8,)
            pl.BlockSpec((8, mp), lambda i: (0, 0)),
            pl.BlockSpec((mp, k), lambda i: (0, 0)),
            pl.BlockSpec((mp, 1), lambda i: (0, 0)),
        ],
        out_specs=pl.BlockSpec((1, 8), lambda i: (0, 0),
                               memory_space=pltpu.MemorySpace.SMEM),
        out_shape=jax.ShapeDtypeStruct((1, 8), jnp.float32),
        compiler_params=pltpu.CompilerParams(
            dimension_semantics=("arbitrary",)),
    )(scalars, boxes_packed, matched_logits, matched_labels)

    # --- final cross-tile reduce / normalize (a few XLA scalar ops) ---
    loss_ce = jnp.sum(partials[:, 0, 0]) / jnp.sum(partials[:, 0, 1])
    card_err = jnp.sum(partials[:, 0, 2]) * (1.0 / b)
    return loss_ce, card_err, epi[0, 2], epi[0, 3], epi[0, 4]


# ----------------------------------------------------------------------------
# Host-side matcher glue (Hungarian assignment — sequential, stays on host)
# ----------------------------------------------------------------------------
def _box_cxcywh_to_xyxy_np(b):
    cx, cy, w, h = b[:, 0], b[:, 1], b[:, 2], b[:, 3]
    return np.stack([cx - 0.5 * w, cy - 0.5 * h, cx + 0.5 * w, cy + 0.5 * h], -1)


def _generalized_box_iou_np(b1, b2):
    area1 = (b1[:, 2] - b1[:, 0]) * (b1[:, 3] - b1[:, 1])
    area2 = (b2[:, 2] - b2[:, 0]) * (b2[:, 3] - b2[:, 1])
    lt = np.maximum(b1[:, None, :2], b2[None, :, :2])
    rb = np.minimum(b1[:, None, 2:], b2[None, :, 2:])
    wh = np.clip(rb - lt, 0, None)
    inter = wh[..., 0] * wh[..., 1]
    union = area1[:, None] + area2[None, :] - inter
    iou = inter / union
    lt_c = np.minimum(b1[:, None, :2], b2[None, :, :2])
    rb_c = np.maximum(b1[:, None, 2:], b2[None, :, 2:])
    wh_c = np.clip(rb_c - lt_c, 0, None)
    area_c = wh_c[..., 0] * wh_c[..., 1]
    return iou - (area_c - union) / area_c


def _linear_sum_assignment(cost):
    """scipy LAP if available, brute force fallback for tiny problems."""
    try:
        from scipy.optimize import linear_sum_assignment
        r, c = linear_sum_assignment(cost)
        return np.asarray(r, np.int64), np.asarray(c, np.int64)
    except Exception:
        nrow, ncol = cost.shape
        best_cost, best = None, None
        for perm in itertools.permutations(range(nrow), ncol):
            cc = sum(cost[perm[j], j] for j in range(ncol))
            if best_cost is None or cc < best_cost:
                best_cost, best = cc, perm
        return np.asarray(best, np.int64), np.arange(ncol, dtype=np.int64)


def hungarian_matcher(logits_np, boxes_np, targets,
                      cost_class=1.0, cost_bbox=5.0, cost_giou=2.0):
    # TODO(synk): host-side LAP solve (sequential algorithm, no clean Pallas
    # equivalent); forces a device->host sync of logits/boxes each step.
    indices = []
    for b, t in enumerate(targets):
        lg = logits_np[b].astype(np.float64)
        prob = np.exp(lg - lg.max(-1, keepdims=True))
        prob = prob / prob.sum(-1, keepdims=True)
        ob = boxes_np[b].astype(np.float64)
        tgt_ids = np.asarray(t['labels'])
        tgt_bbox = np.asarray(t['boxes'], dtype=np.float64)
        c_class = -prob[:, tgt_ids]
        c_bbox = np.abs(ob[:, None, :] - tgt_bbox[None, :, :]).sum(-1)
        c_giou = -_generalized_box_iou_np(_box_cxcywh_to_xyxy_np(ob),
                                          _box_cxcywh_to_xyxy_np(tgt_bbox))
        C = cost_bbox * c_bbox + cost_class * c_class + cost_giou * c_giou
        indices.append(_linear_sum_assignment(C))
    return indices


# ----------------------------------------------------------------------------
# SetCriterion wrapper
# ----------------------------------------------------------------------------
class SetCriterionPallas:
    def __init__(self, num_classes, eos_coef,
                 losses=('labels', 'cardinality', 'boxes'),
                 cost_class=1.0, cost_bbox=5.0, cost_giou=2.0,
                 weight_dict=None):
        self.num_classes = num_classes
        self.eos_coef = eos_coef
        self.losses = losses
        self.cost_class = cost_class
        self.cost_bbox = cost_bbox
        self.cost_giou = cost_giou
        self.weight_dict = weight_dict or {}
        # TODO(synk): loss_masks (interpolate + focal/dice on nested mask
        # tensors) not implemented; no 'pred_masks' in this synthetic setup.
        # TODO(synk): aux_outputs loop not implemented; when added, stack the
        # per-layer logits into [L, B, Q, K] and add L as a leading grid axis
        # (re-derive the VMEM tile budget for v7x's 64 MiB when doing so).

    def forward(self, outputs, targets):
        pred_logits = outputs['pred_logits']    # [B, Q, K] (f32 or bf16)
        pred_boxes = outputs['pred_boxes']      # [B, Q, 4]
        B, Q, K = pred_logits.shape

        logits_np = np.asarray(pred_logits, dtype=np.float32)  # host sync (matcher)
        boxes_np = np.asarray(pred_boxes, dtype=np.float32)
        indices = hungarian_matcher(logits_np, boxes_np, targets,
                                    self.cost_class, self.cost_bbox,
                                    self.cost_giou)

        m_total = int(sum(len(t['labels']) for t in targets))
        num_boxes = max(float(m_total), 1.0)
        m_pad = max(_M_BUCKET, ((m_total + _M_BUCKET - 1) // _M_BUCKET) * _M_BUCKET)

        target_classes = np.full((B, Q, 1), self.num_classes, dtype=np.int32)
        src_box = np.zeros((m_pad, 4), np.float32)
        tgt_box = np.zeros((m_pad, 4), np.float32)
        mlog = np.zeros((m_pad, K), np.float32)
        mlab = np.zeros((m_pad, 1), np.int32)
        ptr = 0
        for b, ((src_idx, tgt_idx), t) in enumerate(zip(indices, targets)):
            n = len(src_idx)
            if n == 0:
                continue
            labels = np.asarray(t['labels']).astype(np.int32)
            tboxes = np.asarray(t['boxes'], dtype=np.float32)
            target_classes[b, src_idx, 0] = labels[tgt_idx]
            src_box[ptr:ptr + n] = boxes_np[b, src_idx]
            tgt_box[ptr:ptr + n] = tboxes[tgt_idx]
            mlog[ptr:ptr + n] = logits_np[b, src_idx]
            mlab[ptr:ptr + n, 0] = labels[tgt_idx]
            ptr += n

        # single packed lane-dense upload for both box sets: (8, M_pad)
        boxes_packed = np.ascontiguousarray(
            np.concatenate([src_box.T, tgt_box.T], axis=0))
        tgt_len = np.asarray([len(t['labels']) for t in targets],
                             np.float32).reshape(B, 1, 1)
        scalars = np.array([m_total, 1.0 / num_boxes, 1.0 / max(m_total, 1),
                            0.0, 0.0, 0.0, 0.0, 0.0], np.float32)

        batch_tile = _pick_batch_tile(B, Q, K)

        loss_ce, card_err, loss_bbox, loss_giou, class_err = _fused_losses(
            pred_logits,
            jnp.asarray(target_classes),
            jnp.asarray(tgt_len),
            jnp.asarray(boxes_packed),
            jnp.asarray(mlog),
            jnp.asarray(mlab),
            jnp.asarray(scalars),
            eos_coef=float(self.eos_coef),
            num_classes=int(self.num_classes),
            batch_tile=int(batch_tile))

        losses = {}
        if 'labels' in self.losses:
            losses['loss_ce'] = loss_ce
            losses['class_error'] = class_err
        if 'cardinality' in self.losses:
            losses['cardinality_error'] = card_err
        if 'boxes' in self.losses:
            losses['loss_bbox'] = loss_bbox
            losses['loss_giou'] = loss_giou
        return losses


# ----------------------------------------------------------------------------
if __name__ == "__main__":
    key = jax.random.PRNGKey(0)
    k1, k2, k3, k4, k5, k6 = jax.random.split(key, 6)

    B, Q, num_classes = 2, 8, 4          # K = num_classes + 1 = 5
    K = num_classes + 1

    pred_logits = jax.random.normal(k1, (B, Q, K), dtype=jnp.float32)
    pred_boxes = jax.nn.sigmoid(jax.random.normal(k2, (B, Q, 4))).astype(jnp.float32)

    targets = [
        {'labels': np.asarray(jax.random.randint(k3, (2,), 0, num_classes)),
         'boxes': np.asarray(jax.nn.sigmoid(jax.random.normal(k4, (2, 4))),
                             dtype=np.float32)},
        {'labels': np.asarray(jax.random.randint(k5, (3,), 0, num_classes)),
         'boxes': np.asarray(jax.nn.sigmoid(jax.random.normal(k6, (3, 4))),
                             dtype=np.float32)},
    ]

    criterion = SetCriterionPallas(num_classes=num_classes, eos_coef=0.1,
                                   losses=('labels', 'cardinality', 'boxes'))
    outputs = {'pred_logits': pred_logits, 'pred_boxes': pred_boxes}
    losses = criterion.forward(outputs, targets)
    jax.block_until_ready(jax.tree_util.tree_leaves(losses))
    print("KERNEL_OK")
</pallas_src>

<mosaic_0001>
module attributes {stable_mosaic.version = 11 : i64} {
  func.func @_cls_card_kernel(%arg0: i32, %arg1: memref<2x8x5xf32, #tpu.memory_space<vmem>>, %arg2: memref<2x8x1xi32, #tpu.memory_space<vmem>>, %arg3: memref<2x1x1xf32, #tpu.memory_space<vmem>>, %arg4: memref<1x1x8xf32, #tpu.memory_space<smem>>) attributes {dimension_semantics = [#tpu.dimension_semantics<parallel>], iteration_bounds = array<i64: 1>, scalar_prefetch = 0 : i64, scratch_operands = 0 : i64, tpu.core_type = #tpu.core_type<tc>, window_params = [{transform_indices = @transform_0, window_bounds = array<i64: 2, 8, 5>}, {transform_indices = @transform_1, window_bounds = array<i64: 2, 8, 1>}, {transform_indices = @transform_2, window_bounds = array<i64: 2, 1, 1>}, {transform_indices = @transform_3, window_bounds = array<i64: 1, 1, 8>}]} {
    %c0 = arith.constant 0 : index
    %c0_0 = arith.constant 0 : index
    %c0_1 = arith.constant 0 : index
    %0 = vector.load %arg1[%c0, %c0_0, %c0_1] : memref<2x8x5xf32, #tpu.memory_space<vmem>>, vector<2x8x5xf32>
    %c0_2 = arith.constant 0 : index
    %c0_3 = arith.constant 0 : index
    %c0_4 = arith.constant 0 : index
    %1 = vector.load %arg2[%c0_2, %c0_3, %c0_4] : memref<2x8x1xi32, #tpu.memory_space<vmem>>, vector<2x8x1xi32>
    %2 = tpu.iota {dimensions = array<i32: 2>} : vector<2x8x5xi32>
    %cst = arith.constant dense<0xFF800000> : vector<2x8xf32>
    %3 = vector.multi_reduction <maximumf>, %0, %cst [2] : vector<2x8x5xf32> to vector<2x8xf32>
    %4 = vector.shape_cast %3 : vector<2x8xf32> to vector<2x8x1xf32>
    %5 = vector.broadcast %4 : vector<2x8x1xf32> to vector<2x8x5xf32>
    %6 = arith.subf %0, %5 : vector<2x8x5xf32>
    %7 = math.exp %6 : vector<2x8x5xf32>
    %cst_5 = arith.constant dense<0.000000e+00> : vector<2x8xf32>
    %8 = vector.multi_reduction <add>, %7, %cst_5 [2] : vector<2x8x5xf32> to vector<2x8xf32>
    %9 = vector.shape_cast %8 : vector<2x8xf32> to vector<2x8x1xf32>
    %10 = math.log %9 : vector<2x8x1xf32>
    %11 = arith.addf %10, %4 : vector<2x8x1xf32>
    %12 = vector.broadcast %1 : vector<2x8x1xi32> to vector<2x8x5xi32>
    %13 = arith.cmpi eq, %2, %12 : vector<2x8x5xi32>
    %cst_6 = arith.constant 0.000000e+00 : f32
    %14 = vector.broadcast %cst_6 : f32 to vector<2x8x5xf32>
    %15 = arith.select %13, %0, %14 : vector<2x8x5xi1>, vector<2x8x5xf32>
    %cst_7 = arith.constant dense<0.000000e+00> : vector<2x8xf32>
    %16 = vector.multi_reduction <add>, %15, %cst_7 [2] : vector<2x8x5xf32> to vector<2x8xf32>
    %17 = vector.shape_cast %16 : vector<2x8xf32> to vector<2x8x1xf32>
    %18 = arith.subf %11, %17 : vector<2x8x1xf32>
    %c4_i32 = arith.constant 4 : i32
    %19 = vector.broadcast %c4_i32 : i32 to vector<2x8x1xi32>
    %20 = arith.cmpi eq, %1, %19 : vector<2x8x1xi32>
    %cst_8 = arith.constant 1.000000e-01 : f32
    %cst_9 = arith.constant 1.000000e+00 : f32
    %21 = vector.broadcast %cst_8 : f32 to vector<2x8x1xf32>
    %22 = vector.broadcast %cst_9 : f32 to vector<2x8x1xf32>
    %23 = arith.select %20, %21, %22 : vector<2x8x1xi1>, vector<2x8x1xf32>
    %24 = arith.mulf %23, %18 : vector<2x8x1xf32>
    %25 = vector.shape_cast %24 : vector<2x8x1xf32> to vector<1x2x8x1xf32>
    %cst_10 = arith.constant dense<0.000000e+00> : vector<1xf32>
    %26 = vector.multi_reduction <add>, %25, %cst_10 [1, 2, 3] : vector<1x2x8x1xf32> to vector<1xf32>
    %27 = vector.shape_cast %26 : vector<1xf32> to vector<1x1x1x1xf32>
    %28 = vector.extract %27[0, 0, 0, 0] : f32 from vector<1x1x1x1xf32>
    %c0_11 = arith.constant 0 : index
    %c0_12 = arith.constant 0 : index
    %c0_13 = arith.constant 0 : index
    %29 = memref.load %arg4[%c0_11, %c0_12, %c0_13] : memref<1x1x8xf32, #tpu.memory_space<smem>>
    memref.store %28, %arg4[%c0_11, %c0_12, %c0_13] : memref<1x1x8xf32, #tpu.memory_space<smem>>
    %30 = vector.shape_cast %23 : vector<2x8x1xf32> to vector<1x2x8x1xf32>
    %cst_14 = arith.constant dense<0.000000e+00> : vector<1xf32>
    %31 = vector.multi_reduction <add>, %30, %cst_14 [1, 2, 3] : vector<1x2x8x1xf32> to vector<1xf32>
    %32 = vector.shape_cast %31 : vector<1xf32> to vector<1x1x1x1xf32>
    %33 = vector.extract %32[0, 0, 0, 0] : f32 from vector<1x1x1x1xf32>
    %c0_15 = arith.constant 0 : index
    %c0_16 = arith.constant 0 : index
    %c1 = arith.constant 1 : index
    %34 = memref.load %arg4[%c0_15, %c0_16, %c1] : memref<1x1x8xf32, #tpu.memory_space<smem>>
    memref.store %33, %arg4[%c0_15, %c0_16, %c1] : memref<1x1x8xf32, #tpu.memory_space<smem>>
    %35 = vector.extract_strided_slice %0 {offsets = [0, 0, 4], sizes = [2, 8, 1], strides = [1, 1, 1]} : vector<2x8x5xf32> to vector<2x8x1xf32>
    %36 = arith.cmpf olt, %35, %4 : vector<2x8x1xf32>
    %37 = arith.extui %36 : vector<2x8x1xi1> to vector<2x8x1xi32>
    %38 = arith.sitofp %37 : vector<2x8x1xi32> to vector<2x8x1xf32>
    %cst_17 = arith.constant dense<0.000000e+00> : vector<2x1xf32>
    %39 = vector.multi_reduction <add>, %38, %cst_17 [1] : vector<2x8x1xf32> to vector<2x1xf32>
    %40 = vector.shape_cast %39 : vector<2x1xf32> to vector<2x1x1xf32>
    %c0_18 = arith.constant 0 : index
    %c0_19 = arith.constant 0 : index
    %c0_20 = arith.constant 0 : index
    %41 = vector.load %arg3[%c0_18, %c0_19, %c0_20] : memref<2x1x1xf32, #tpu.memory_space<vmem>>, vector<2x1x1xf32>
    %42 = arith.subf %40, %41 : vector<2x1x1xf32>
    %43 = math.absf %42 : vector<2x1x1xf32>
    %44 = vector.shape_cast %43 : vector<2x1x1xf32> to vector<1x2x1x1xf32>
    %cst_21 = arith.constant dense<0.000000e+00> : vector<1xf32>
    %45 = vector.multi_reduction <add>, %44, %cst_21 [1, 2, 3] : vector<1x2x1x1xf32> to vector<1xf32>
    %46 = vector.shape_cast %45 : vector<1xf32> to vector<1x1x1x1xf32>
    %47 = vector.extract %46[0, 0, 0, 0] : f32 from vector<1x1x1x1xf32>
    %c0_22 = arith.constant 0 : index
    %c0_23 = arith.constant 0 : index
    %c2 = arith.constant 2 : index
    %48 = memref.load %arg4[%c0_22, %c0_23, %c2] : memref<1x1x8xf32, #tpu.memory_space<smem>>
    memref.store %47, %arg4[%c0_22, %c0_23, %c2] : memref<1x1x8xf32, #tpu.memory_space<smem>>
    %cst_24 = arith.constant 0.000000e+00 : f32
    %c0_25 = arith.constant 0 : index
    %c0_26 = arith.constant 0 : index
    %c3 = arith.constant 3 : index
    %49 = memref.load %arg4[%c0_25, %c0_26, %c3] : memref<1x1x8xf32, #tpu.memory_space<smem>>
    memref.store %cst_24, %arg4[%c0_25, %c0_26, %c3] : memref<1x1x8xf32, #tpu.memory_space<smem>>
    %cst_27 = arith.constant 0.000000e+00 : f32
    %c0_28 = arith.constant 0 : index
    %c0_29 = arith.constant 0 : index
    %c4 = arith.constant 4 : index
    %50 = memref.load %arg4[%c0_28, %c0_29, %c4] : memref<1x1x8xf32, #tpu.memory_space<smem>>
    memref.store %cst_27, %arg4[%c0_28, %c0_29, %c4] : memref<1x1x8xf32, #tpu.memory_space<smem>>
    %cst_30 = arith.constant 0.000000e+00 : f32
    %c0_31 = arith.constant 0 : index
    %c0_32 = arith.constant 0 : index
    %c5 = arith.constant 5 : index
    %51 = memref.load %arg4[%c0_31, %c0_32, %c5] : memref<1x1x8xf32, #tpu.memory_space<smem>>
    memref.store %cst_30, %arg4[%c0_31, %c0_32, %c5] : memref<1x1x8xf32, #tpu.memory_space<smem>>
    %cst_33 = arith.constant 0.000000e+00 : f32
    %c0_34 = arith.constant 0 : index
    %c0_35 = arith.constant 0 : index
    %c6 = arith.constant 6 : index
    %52 = memref.load %arg4[%c0_34, %c0_35, %c6] : memref<1x1x8xf32, #tpu.memory_space<smem>>
    memref.store %cst_33, %arg4[%c0_34, %c0_35, %c6] : memref<1x1x8xf32, #tpu.memory_space<smem>>
    %cst_36 = arith.constant 0.000000e+00 : f32
    %c0_37 = arith.constant 0 : index
    %c0_38 = arith.constant 0 : index
    %c7 = arith.constant 7 : index
    %53 = memref.load %arg4[%c0_37, %c0_38, %c7] : memref<1x1x8xf32, #tpu.memory_space<smem>>
    memref.store %cst_36, %arg4[%c0_37, %c0_38, %c7] : memref<1x1x8xf32, #tpu.memory_space<smem>>
    return
  }
  func.func @transform_0(%arg0: i32) -> (i32, i32, i32) {
    %c0_i32 = arith.constant 0 : i32
    %c0_i32_0 = arith.constant 0 : i32
    %c0_i32_1 = arith.constant 0 : i32
    return %arg0, %c0_i32, %c0_i32_0 : i32, i32, i32
  }
  func.func @transform_1(%arg0: i32) -> (i32, i32, i32) {
    %c0_i32 = arith.constant 0 : i32
    %c0_i32_0 = arith.constant 0 : i32
    %c0_i32_1 = arith.constant 0 : i32
    return %arg0, %c0_i32, %c0_i32_0 : i32, i32, i32
  }
  func.func @transform_2(%arg0: i32) -> (i32, i32, i32) {
    %c0_i32 = arith.constant 0 : i32
    %c0_i32_0 = arith.constant 0 : i32
    %c0_i32_1 = arith.constant 0 : i32
    return %arg0, %c0_i32, %c0_i32_0 : i32, i32, i32
  }
  func.func @transform_3(%arg0: i32) -> (i32, i32, i32) {
    %c0_i32 = arith.constant 0 : i32
    %c0_i32_0 = arith.constant 0 : i32
    %c0_i32_1 = arith.constant 0 : i32
    return %arg0, %c0_i32, %c0_i32_0 : i32, i32, i32
  }
}

module attributes {stable_mosaic.version = 11 : i64} {
  func.func @_matched_epilogue_kernel(%arg0: i32, %arg1: memref<8xf32, #tpu.memory_space<smem>>, %arg2: memref<8x128xf32, #tpu.memory_space<vmem>>, %arg3: memref<128x5xf32, #tpu.memory_space<vmem>>, %arg4: memref<128x1xi32, #tpu.memory_space<vmem>>, %arg5: memref<1x8xf32, #tpu.memory_space<smem>>) attributes {dimension_semantics = [#tpu.dimension_semantics<arbitrary>], iteration_bounds = array<i64: 1>, scalar_prefetch = 0 : i64, scratch_operands = 0 : i64, tpu.core_type = #tpu.core_type<tc>, window_params = [{transform_indices = @transform_0, window_bounds = array<i64: 8>}, {pipeline_mode = #tpu.pipeline_mode<synchronous>, transform_indices = @transform_1, window_bounds = array<i64: 8, 128>}, {pipeline_mode = #tpu.pipeline_mode<synchronous>, transform_indices = @transform_2, window_bounds = array<i64: 128, 5>}, {pipeline_mode = #tpu.pipeline_mode<synchronous>, transform_indices = @transform_3, window_bounds = array<i64: 128, 1>}, {transform_indices = @transform_4, window_bounds = array<i64: 1, 8>}]} {
    %c0 = arith.constant 0 : index
    %0 = memref.load %arg1[%c0] : memref<8xf32, #tpu.memory_space<smem>>
    %c1 = arith.constant 1 : index
    %1 = memref.load %arg1[%c1] : memref<8xf32, #tpu.memory_space<smem>>
    %c2 = arith.constant 2 : index
    %2 = memref.load %arg1[%c2] : memref<8xf32, #tpu.memory_space<smem>>
    %c0_0 = arith.constant 0 : index
    %c0_1 = arith.constant 0 : index
    %3 = vector.load %arg2[%c0_0, %c0_1] : memref<8x128xf32, #tpu.memory_space<vmem>>, vector<8x128xf32>
    %4 = tpu.iota {dimensions = array<i32: 1>} : vector<1x128xi32>
    %5 = arith.sitofp %4 : vector<1x128xi32> to vector<1x128xf32>
    %6 = vector.broadcast %0 : f32 to vector<1x128xf32>
    %7 = arith.cmpf olt, %5, %6 : vector<1x128xf32>
    %8 = arith.extui %7 : vector<1x128xi1> to vector<1x128xi32>
    %9 = arith.sitofp %8 : vector<1x128xi32> to vector<1x128xf32>
    %10 = vector.extract_strided_slice %3 {offsets = [0, 0], sizes = [4, 128], strides = [1, 1]} : vector<8x128xf32> to vector<4x128xf32>
    %11 = vector.extract_strided_slice %3 {offsets = [4, 0], sizes = [4, 128], strides = [1, 1]} : vector<8x128xf32> to vector<4x128xf32>
    %12 = arith.subf %10, %11 : vector<4x128xf32>
    %13 = math.absf %12 : vector<4x128xf32>
    %14 = vector.broadcast %9 : vector<1x128xf32> to vector<4x128xf32>
    %15 = arith.mulf %13, %14 : vector<4x128xf32>
    %16 = vector.shape_cast %15 : vector<4x128xf32> to vector<1x4x128xf32>
    %cst = arith.constant dense<0.000000e+00> : vector<1xf32>
    %17 = vector.multi_reduction <add>, %16, %cst [1, 2] : vector<1x4x128xf32> to vector<1xf32>
    %18 = vector.shape_cast %17 : vector<1xf32> to vector<1x1x1xf32>
    %19 = vector.extract %18[0, 0, 0] : f32 from vector<1x1x1xf32>
    %20 = arith.mulf %19, %1 : f32
    %c0_2 = arith.constant 0 : index
    %c2_3 = arith.constant 2 : index
    %21 = memref.load %arg5[%c0_2, %c2_3] : memref<1x8xf32, #tpu.memory_space<smem>>
    memref.store %20, %arg5[%c0_2, %c2_3] : memref<1x8xf32, #tpu.memory_space<smem>>
    %22 = vector.extract_strided_slice %3 {offsets = [0, 0], sizes = [1, 128], strides = [1, 1]} : vector<8x128xf32> to vector<1x128xf32>
    %23 = vector.extract_strided_slice %3 {offsets = [1, 0], sizes = [1, 128], strides = [1, 1]} : vector<8x128xf32> to vector<1x128xf32>
    %24 = vector.extract_strided_slice %3 {offsets = [2, 0], sizes = [1, 128], strides = [1, 1]} : vector<8x128xf32> to vector<1x128xf32>
    %25 = vector.extract_strided_slice %3 {offsets = [3, 0], sizes = [1, 128], strides = [1, 1]} : vector<8x128xf32> to vector<1x128xf32>
    %26 = vector.extract_strided_slice %3 {offsets = [4, 0], sizes = [1, 128], strides = [1, 1]} : vector<8x128xf32> to vector<1x128xf32>
    %27 = vector.extract_strided_slice %3 {offsets = [5, 0], sizes = [1, 128], strides = [1, 1]} : vector<8x128xf32> to vector<1x128xf32>
    %28 = vector.extract_strided_slice %3 {offsets = [6, 0], sizes = [1, 128], strides = [1, 1]} : vector<8x128xf32> to vector<1x128xf32>
    %29 = vector.extract_strided_slice %3 {offsets = [7, 0], sizes = [1, 128], strides = [1, 1]} : vector<8x128xf32> to vector<1x128xf32>
    %cst_4 = arith.constant 5.000000e-01 : f32
    %30 = vector.broadcast %cst_4 : f32 to vector<1x128xf32>
    %31 = arith.mulf %30, %24 : vector<1x128xf32>
    %32 = arith.subf %22, %31 : vector<1x128xf32>
    %cst_5 = arith.constant 5.000000e-01 : f32
    %33 = vector.broadcast %cst_5 : f32 to vector<1x128xf32>
    %34 = arith.mulf %33, %25 : vector<1x128xf32>
    %35 = arith.subf %23, %34 : vector<1x128xf32>
    %cst_6 = arith.constant 5.000000e-01 : f32
    %36 = vector.broadcast %cst_6 : f32 to vector<1x128xf32>
    %37 = arith.mulf %36, %24 : vector<1x128xf32>
    %38 = arith.addf %22, %37 : vector<1x128xf32>
    %cst_7 = arith.constant 5.000000e-01 : f32
    %39 = vector.broadcast %cst_7 : f32 to vector<1x128xf32>
    %40 = arith.mulf %39, %25 : vector<1x128xf32>
    %41 = arith.addf %23, %40 : vector<1x128xf32>
    %cst_8 = arith.constant 5.000000e-01 : f32
    %42 = vector.broadcast %cst_8 : f32 to vector<1x128xf32>
    %43 = arith.mulf %42, %28 : vector<1x128xf32>
    %44 = arith.subf %26, %43 : vector<1x128xf32>
    %cst_9 = arith.constant 5.000000e-01 : f32
    %45 = vector.broadcast %cst_9 : f32 to vector<1x128xf32>
    %46 = arith.mulf %45, %29 : vector<1x128xf32>
    %47 = arith.subf %27, %46 : vector<1x128xf32>
    %cst_10 = arith.constant 5.000000e-01 : f32
    %48 = vector.broadcast %cst_10 : f32 to vector<1x128xf32>
    %49 = arith.mulf %48, %28 : vector<1x128xf32>
    %50 = arith.addf %26, %49 : vector<1x128xf32>
    %cst_11 = arith.constant 5.000000e-01 : f32
    %51 = vector.broadcast %cst_11 : f32 to vector<1x128xf32>
    %52 = arith.mulf %51, %29 : vector<1x128xf32>
    %53 = arith.addf %27, %52 : vector<1x128xf32>
    %54 = arith.mulf %24, %25 : vector<1x128xf32>
    %55 = arith.mulf %28, %29 : vector<1x128xf32>
    %56 = arith.maximumf %32, %44 : vector<1x128xf32>
    %57 = arith.maximumf %35, %47 : vector<1x128xf32>
    %58 = arith.minimumf %38, %50 : vector<1x128xf32>
    %59 = arith.minimumf %41, %53 : vector<1x128xf32>
    %60 = arith.subf %58, %56 : vector<1x128xf32>
    %cst_12 = arith.constant 0.000000e+00 : f32
    %61 = vector.broadcast %cst_12 : f32 to vector<1x128xf32>
    %62 = arith.maximumf %60, %61 : vector<1x128xf32>
    %63 = arith.subf %59, %57 : vector<1x128xf32>
    %cst_13 = arith.constant 0.000000e+00 : f32
    %64 = vector.broadcast %cst_13 : f32 to vector<1x128xf32>
    %65 = arith.maximumf %63, %64 : vector<1x128xf32>
    %66 = arith.mulf %62, %65 : vector<1x128xf32>
    %67 = arith.addf %54, %55 : vector<1x128xf32>
    %68 = arith.subf %67, %66 : vector<1x128xf32>
    %cst_14 = arith.constant 9.99999996E-13 : f32
    %69 = vector.broadcast %cst_14 : f32 to vector<1x128xf32>
    %70 = arith.addf %68, %69 : vector<1x128xf32>
    %71 = arith.divf %66, %70 : vector<1x128xf32>
    %72 = arith.minimumf %32, %44 : vector<1x128xf32>
    %73 = arith.minimumf %35, %47 : vector<1x128xf32>
    %74 = arith.maximumf %38, %50 : vector<1x128xf32>
    %75 = arith.maximumf %41, %53 : vector<1x128xf32>
    %76 = arith.subf %74, %72 : vector<1x128xf32>
    %cst_15 = arith.constant 0.000000e+00 : f32
    %77 = vector.broadcast %cst_15 : f32 to vector<1x128xf32>
    %78 = arith.maximumf %76, %77 : vector<1x128xf32>
    %79 = arith.subf %75, %73 : vector<1x128xf32>
    %cst_16 = arith.constant 0.000000e+00 : f32
    %80 = vector.broadcast %cst_16 : f32 to vector<1x128xf32>
    %81 = arith.maximumf %79, %80 : vector<1x128xf32>
    %82 = arith.mulf %78, %81 : vector<1x128xf32>
    %83 = arith.subf %82, %68 : vector<1x128xf32>
    %cst_17 = arith.constant 9.99999996E-13 : f32
    %84 = vector.broadcast %cst_17 : f32 to vector<1x128xf32>
    %85 = arith.addf %82, %84 : vector<1x128xf32>
    %86 = arith.divf %83, %85 : vector<1x128xf32>
    %87 = arith.subf %71, %86 : vector<1x128xf32>
    %cst_18 = arith.constant 1.000000e+00 : f32
    %88 = vector.broadcast %cst_18 : f32 to vector<1x128xf32>
    %89 = arith.subf %88, %87 : vector<1x128xf32>
    %90 = arith.mulf %89, %9 : vector<1x128xf32>
    %91 = vector.shape_cast %90 : vector<1x128xf32> to vector<1x1x128xf32>
    %cst_19 = arith.constant dense<0.000000e+00> : vector<1xf32>
    %92 = vector.multi_reduction <add>, %91, %cst_19 [1, 2] : vector<1x1x128xf32> to vector<1xf32>
    %93 = vector.shape_cast %92 : vector<1xf32> to vector<1x1x1xf32>
    %94 = vector.extract %93[0, 0, 0] : f32 from vector<1x1x1xf32>
    %95 = arith.mulf %94, %1 : f32
    %c0_20 = arith.constant 0 : index
    %c3 = arith.constant 3 : index
    %96 = memref.load %arg5[%c0_20, %c3] : memref<1x8xf32, #tpu.memory_space<smem>>
    memref.store %95, %arg5[%c0_20, %c3] : memref<1x8xf32, #tpu.memory_space<smem>>
    %c0_21 = arith.constant 0 : index
    %c0_22 = arith.constant 0 : index
    %97 = vector.load %arg3[%c0_21, %c0_22] : memref<128x5xf32, #tpu.memory_space<vmem>>, vector<128x5xf32>
    %c0_23 = arith.constant 0 : index
    %c0_24 = arith.constant 0 : index
    %98 = vector.load %arg4[%c0_23, %c0_24] : memref<128x1xi32, #tpu.memory_space<vmem>>, vector<128x1xi32>
    %99 = tpu.iota {dimensions = array<i32: 1>} : vector<128x5xi32>
    %100 = vector.broadcast %98 : vector<128x1xi32> to vector<128x5xi32>
    %101 = arith.cmpi eq, %99, %100 : vector<128x5xi32>
    %cst_25 = arith.constant 0.000000e+00 : f32
    %102 = vector.broadcast %cst_25 : f32 to vector<128x5xf32>
    %103 = arith.select %101, %97, %102 : vector<128x5xi1>, vector<128x5xf32>
    %cst_26 = arith.constant dense<0.000000e+00> : vector<128xf32>
    %104 = vector.multi_reduction <add>, %103, %cst_26 [1] : vector<128x5xf32> to vector<128xf32>
    %105 = vector.shape_cast %104 : vector<128xf32> to vector<128x1xf32>
    %cst_27 = arith.constant dense<0xFF800000> : vector<128xf32>
    %106 = vector.multi_reduction <maximumf>, %97, %cst_27 [1] : vector<128x5xf32> to vector<128xf32>
    %107 = vector.shape_cast %106 : vector<128xf32> to vector<128x1xf32>
    %108 = tpu.iota {dimensions = array<i32: 0>} : vector<128x1xi32>
    %109 = arith.sitofp %108 : vector<128x1xi32> to vector<128x1xf32>
    %110 = vector.broadcast %0 : f32 to vector<128x1xf32>
    %111 = arith.cmpf olt, %109, %110 : vector<128x1xf32>
    %112 = arith.extui %111 : vector<128x1xi1> to vector<128x1xi32>
    %113 = arith.sitofp %112 : vector<128x1xi32> to vector<128x1xf32>
    %114 = arith.cmpf oge, %105, %107 : vector<128x1xf32>
    %115 = arith.extui %114 : vector<128x1xi1> to vector<128x1xi32>
    %116 = arith.sitofp %115 : vector<128x1xi32> to vector<128x1xf32>
    %117 = arith.mulf %116, %113 : vector<128x1xf32>
    %118 = vector.shape_cast %117 : vector<128x1xf32> to vector<1x128x1xf32>
    %cst_28 = arith.constant dense<0.000000e+00> : vector<1xf32>
    %119 = vector.multi_reduction <add>, %118, %cst_28 [1, 2] : vector<1x128x1xf32> to vector<1xf32>
    %120 = vector.shape_cast %119 : vector<1xf32> to vector<1x1x1xf32>
    %121 = vector.extract %120[0, 0, 0] : f32 from vector<1x1x1xf32>
    %cst_29 = arith.constant 1.000000e+02 : f32
    %122 = arith.mulf %121, %cst_29 : f32
    %123 = arith.mulf %122, %2 : f32
    %cst_30 = arith.constant 1.000000e+02 : f32
    %124 = arith.subf %cst_30, %123 : f32
    %c0_31 = arith.constant 0 : index
    %c4 = arith.constant 4 : index
    %125 = memref.load %arg5[%c0_31, %c4] : memref<1x8xf32, #tpu.memory_space<smem>>
    memref.store %124, %arg5[%c0_31, %c4] : memref<1x8xf32, #tpu.memory_space<smem>>
    %cst_32 = arith.constant 0.000000e+00 : f32
    %c0_33 = arith.constant 0 : index
    %c0_34 = arith.constant 0 : index
    %126 = memref.load %arg5[%c0_33, %c0_34] : memref<1x8xf32, #tpu.memory_space<smem>>
    memref.store %cst_32, %arg5[%c0_33, %c0_34] : memref<1x8xf32, #tpu.memory_space<smem>>
    %cst_35 = arith.constant 0.000000e+00 : f32
    %c0_36 = arith.constant 0 : index
    %c1_37 = arith.constant 1 : index
    %127 = memref.load %arg5[%c0_36, %c1_37] : memref<1x8xf32, #tpu.memory_space<smem>>
    memref.store %cst_35, %arg5[%c0_36, %c1_37] : memref<1x8xf32, #tpu.memory_space<smem>>
    %cst_38 = arith.constant 0.000000e+00 : f32
    %c0_39 = arith.constant 0 : index
    %c5 = arith.constant 5 : index
    %128 = memref.load %arg5[%c0_39, %c5] : memref<1x8xf32, #tpu.memory_space<smem>>
    memref.store %cst_38, %arg5[%c0_39, %c5] : memref<1x8xf32, #tpu.memory_space<smem>>
    %cst_40 = arith.constant 0.000000e+00 : f32
    %c0_41 = arith.constant 0 : index
    %c6 = arith.constant 6 : index
    %129 = memref.load %arg5[%c0_41, %c6] : memref<1x8xf32, #tpu.memory_space<smem>>
    memref.store %cst_40, %arg5[%c0_41, %c6] : memref<1x8xf32, #tpu.memory_space<smem>>
    %cst_42 = arith.constant 0.000000e+00 : f32
    %c0_43 = arith.constant 0 : index
    %c7 = arith.constant 7 : index
    %130 = memref.load %arg5[%c0_43, %c7] : memref<1x8xf32, #tpu.memory_space<smem>>
    memref.store %cst_42, %arg5[%c0_43, %c7] : memref<1x8xf32, #tpu.memory_space<smem>>
    return
  }
  func.func @transform_0(%arg0: i32) -> i32 {
    %c0_i32 = arith.constant 0 : i32
    %c0_i32_0 = arith.constant 0 : i32
    return %c0_i32 : i32
  }
  func.func @transform_1(%arg0: i32) -> (i32, i32) {
    %c0_i32 = arith.constant 0 : i32
    %c0_i32_0 = arith.constant 0 : i32
    %c0_i32_1 = arith.constant 0 : i32
    return %c0_i32, %c0_i32_0 : i32, i32
  }
  func.func @transform_2(%arg0: i32) -> (i32, i32) {
    %c0_i32 = arith.constant 0 : i32
    %c0_i32_0 = arith.constant 0 : i32
    %c0_i32_1 = arith.constant 0 : i32
    return %c0_i32, %c0_i32_0 : i32, i32
  }
  func.func @transform_3(%arg0: i32) -> (i32, i32) {
    %c0_i32 = arith.constant 0 : i32
    %c0_i32_0 = arith.constant 0 : i32
    %c0_i32_1 = arith.constant 0 : i32
    return %c0_i32, %c0_i32_0 : i32, i32
  }
  func.func @transform_4(%arg0: i32) -> (i32, i32) {
    %c0_i32 = arith.constant 0 : i32
    %c0_i32_0 = arith.constant 0 : i32
    %c0_i32_1 = arith.constant 0 : i32
    return %c0_i32, %c0_i32_0 : i32, i32
  }
}

</mosaic_0001>

<bundles_post_ra>
// kernel: _fused_losses.2
= control target key start
LH: loop header
LB: loop body
LE: loop exit
PB: predicated region body
PF: predicated region fallthrough
CT: control target
= control target key end

     0   :  { %vm21_vm0 = vcmask 39936   ;;  %v225_v3 = vmov 0   ;;  %s226_s20 = smov 4   ;;  %s298_s0 = inlined_call_operand.vmem [shape: f32[2,8,5], index: 0, kind: input, shape index: {}]   ;;  %s299_s1 = inlined_call_operand.vmem [shape: s32[2,8,1], index: 1, kind: input, shape index: {}]   ;;  %s300_s2 = inlined_call_operand.vmem [shape: f32[2,1,1], index: 2, kind: input, shape index: {}]   ;;  %s301_s3 = inlined_call_operand.vmem [shape: f32[1,1,8], index: 3, kind: output, shape index: {}]  }
   0x1   :  { %v15_v0 = vld [vmem:[%s298_s0] sm:$0xff]  ;;  %199 = vset.pattern.permute.xlu1 %v225_v3  ;;  %200 = vset.pattern.permute.xlu0 %v225_v3  ;;  %v16_v5 = vld [vmem:[%s298_s0 + $0x8] sm:$0xff] }
   0x2   :  { %v258_v1 = vld [vmem:[%s299_s1] sm:$0xff]  ;;  %v22_v2 = vsel %vm21_vm0, %v15_v0, -inf }
   0x3   :  { %23 = vmax.xlane.f32.xlu0 %v22_v2  ;;  %47 = vperm.xlu1 %199, %v258_v1   ;;  %v201_v4 = vld [vmem:[%s300_s2] ss:$0 sm:$0xff] }
   0x4   :  { %126 = vrot.lane.b32.xlu2 %v201_v4, %s226_s20 }
   0x5   :  { %8 = vsyncpa [#allocation3], 0  ;;  %v25_v6 = vsel %vm21_vm0, %v16_v5, -inf  ;;  %v272_v7 = vld [vmem:[%s299_s1 + $0x8] sm:$0xff]  ;;  %v202_v8 = vld [vmem:[%s300_s2 + $0x1] ss:$0 sm:$0xff]  ;;  %v19_v9 = vlaneseq }
   0x6   :  { %vm105_vm3 = vcmask 39968   ;;  %v227_v17 = vmov 0.0   ;;  %s228_s0 = smov 124   ;;  %vm64_vm6 = vcmp.eq.s32.totalorder %v258_v1, 4  ;;  %vm65_vm7 = vcmp.eq.s32.totalorder %v272_v7, 4  ;;  %s230_s1 = smov 0.0  }
   0x7   :  { %v20_v10 = vand.u32 127, %v19_v9  ;;  %v229_v50 = vmov 1.0   ;;  %vm70_vm8 = vcmask 7168   ;;  %vm144_vm9 = vcmask 0   ;;  %160 = sst [smem:[#allocation2 + $0x3]] %s230_s1  ;;  %s174_s28 = sshll.u32 %s301_s3, 4  ;;  %s175_s28 = int_to_ptr.vmem [resolvable:$true] %s174_s28 }
   0x8   :  { %v66_v51 = vsel %vm64_vm6, 0.1, %v229_v50  ;;  %v67_v52 = vsel %vm65_vm7, 0.1, %v229_v50  ;;  %162 = sst [smem:[#allocation2 + $0x4]] %s230_s1  ;;  %s231_s30 = smov [#allocation2]  }
   0x9   :  { %v85_v53 = vsel %vm70_vm8, %v66_v51, 0.0  ;;  %v86_v54 = vsel %vm70_vm8, %v67_v52, 0.0  ;;  %164 = sst [smem:[#allocation2 + $0x5]] %s230_s1 }
   0xa   :  { %v87_v55 = vadd.f32 %v86_v54, %v85_v53  ;;  %166 = sst [smem:[#allocation2 + $0x6]] %s230_s1 }
   0xb   :  { %26 = vmax.xlane.f32.xlu0 %v25_v6  ;;  %50 = vperm.xlu1 %199, %v272_v7   ;;  %168 = sst [smem:[#allocation2 + $0x7]] %s230_s1 }
   0xc   :  { %128 = vrot.lane.b32.xlu2 %v202_v8, %s226_s20 }
  0x5e   :  { %v127_v42 = vpop.permute.xlu2 %126 }
  0x66   :  { %v129_v47 = vpop.permute.xlu2 %128 }
  0x75   :  { %v48_v11 = vpop.permute.xlu1 %47 }
  0x76   :  { %v278_v12 = vpop.xlane.xlu0 %23  ;;  %vm52_vm1 = vcmp.eq.s32.totalorder %v20_v10, %v48_v11 }
  0x77   :  { %v28_v13 = vsub.f32 %v15_v0, %v278_v12  ;;  %v54_v14 = vsel %vm52_vm1, %v15_v0, 0.0  ;;  %vm99_vm2 = vcmp.lt.f32.partialorder %v15_v0, %v278_v12 }
  0x78   :  { %v56_v15 = vsel %vm21_vm0, %v54_v14, 0.0  ;;  %v184_v18 = vsel %vm99_vm2, 1.0, %v227_v17 }
  0x79   :  { %v30_v16 = vmul.f32 1.442695, %v28_v13  ;;  %57 = vadd.xlane.f32.xlu2 %v56_v15  ;;  %v106_v19 = vsel %vm105_vm3, %v184_v18, 0.0 }
  0x7a   :  { %v107_v23 = vrot.slane %v106_v19, 4 }
  0x7b   :  { %203 = vpow2.f32 %v30_v16 }
  0x7c   :  { %v108_v28 = vadd.f32 %v107_v23, %v106_v19 }
  0x7d   :  { %v51_v25 = vpop.permute.xlu1 %50 }
  0x7e   :  { %v27_v20 = vpop.xlane.xlu0 %26  ;;  %vm53_vm5 = vcmp.eq.s32.totalorder %v20_v10, %v51_v25  ;;  %v109_v33 = vrot.slane %v108_v28, 2 }
  0x7f   :  { %v29_v21 = vsub.f32 %v16_v5, %v27_v20  ;;  %vm100_vm4 = vcmp.lt.f32.partialorder %v16_v5, %v27_v20  ;;  %v55_v30 = vsel %vm53_vm5, %v16_v5, 0.0 }
  0x80   :  { %v185_v27 = vsel %vm100_vm4, 1.0, %v227_v17  ;;  %v59_v34 = vsel %vm21_vm0, %v55_v30, 0.0  ;;  %v110_v36 = vadd.f32 %v109_v33, %v108_v28 }
  0x81   :  { %v204_v22 = vpop.eup %203  ;;  %v32_v24 = vmul.f32 1.442695, %v29_v21  ;;  %v113_v29 = vsel %vm105_vm3, %v185_v27, 0.0 }
  0x82   :  { %v34_v26 = vsel %vm21_vm0, %v204_v22, 0.0  ;;  %v114_v32 = vrot.slane %v113_v29, 4  ;;  %v111_v38 = vrot.slane %v110_v36, 1 }
  0x83   :  { %205 = vpow2.f32 %v32_v24  ;;  %35 = vadd.xlane.f32.xlu0 %v34_v26 }
  0x84   :  { %v115_v37 = vadd.f32 %v114_v32, %v113_v29  ;;  %v112_v40 = vadd.f32 %v111_v38, %v110_v36 }
  0x86   :  { %v116_v39 = vrot.slane %v115_v37, 2  ;;  %v132_v43 = vsub.f32 %v112_v40, %v127_v42 }
  0x88   :  { %v117_v41 = vadd.f32 %v116_v39, %v115_v37  ;;  %v134_v45 = vand.u32 2147483647, %v132_v43 }
  0x89   :  { %v206_v31 = vpop.eup %205 }
  0x8a   :  { %v37_v35 = vsel %vm21_vm0, %v206_v31, 0.0  ;;  %v118_v44 = vrot.slane %v117_v41, 1 }
  0x8b   :  { %60 = vadd.xlane.f32.xlu0 %v59_v34  ;;  %38 = vadd.xlane.f32.xlu1 %v37_v35 }
  0x8c   :  { %v119_v46 = vadd.f32 %v118_v44, %v117_v41 }
  0x8e   :  { %v133_v48 = vsub.f32 %v119_v46, %v129_v47 }
  0x90   :  { %v135_v49 = vand.u32 2147483647, %v133_v48 }
  0x93   :  { %88 = vadd.xlane.f32.xlu1 %v87_v55 }
  0x9f   :  { %138 = vrot.lane.b32.xlu0 %v134_v45, %s228_s0 }
  0xa7   :  { %140 = vrot.lane.b32.xlu0 %v135_v49, %s228_s0 }
  0xec   :  { %v58_v62 = vpop.xlane.xlu2 %57 }
  0xf6   :  { %v36_v56 = vpop.xlane.xlu0 %35 }
  0xf7   :  { %207 = vlog2.f32 %v36_v56 }
  0xfd   :  { %v208_v57 = vpop.eup %207 }
  0xfe   :  { %v41_v58 = vmul.f32 0.6931472, %v208_v57  ;;  %v39_v59 = vpop.xlane.xlu1 %38  ;;  %v61_v2 = vpop.xlane.xlu0 %60 }
  0xff   :  { %209 = vlog2.f32 %v39_v59 }
 0x100   :  { %v44_v60 = vadd.f32 %v41_v58, %v278_v12 }
 0x102   :  { %v62_v63 = vsub.f32 %v44_v60, %v58_v62 }
 0x104   :  { %v68_v4 = vmul.f32 %v66_v51, %v62_v63 }
 0x105   :  { %v210_v61 = vpop.eup %209 }
 0x106   :  { %v43_v0 = vmul.f32 0.6931472, %v210_v61  ;;  %v71_v6 = vsel %vm70_vm8, %v68_v4, 0.0  ;;  %v89_v14 = vpop.xlane.xlu1 %88 }
 0x107   :  { %v90_v15 = vrot.slane %v89_v14, 4 }
 0x108   :  { %v45_v1 = vadd.f32 %v43_v0, %v27_v20 }
 0x109   :  { %v91_v16 = vadd.f32 %v90_v15, %v89_v14 }
 0x10a   :  { %v63_v3 = vsub.f32 %v45_v1, %v61_v2 }
 0x10b   :  { %v92_v17 = vrot.slane %v91_v16, 2 }
 0x10c   :  { %v69_v5 = vmul.f32 %v67_v52, %v63_v3 }
 0x10d   :  { %v93_v20 = vadd.f32 %v92_v17, %v91_v16 }
 0x10e   :  { %v72_v7 = vsel %vm70_vm8, %v69_v5, 0.0 }
 0x10f   :  { %v73_v8 = vadd.f32 %v72_v7, %v71_v6  ;;  %v94_v23 = vrot.slane %v93_v20, 1 }
 0x111   :  { %74 = vadd.xlane.f32.xlu2 %v73_v8  ;;  %v139_v9 = vpop.permute.xlu0 %138  ;;  %v95_v26 = vadd.f32 %v94_v23, %v93_v20 }
 0x112   :  { %v145_v11 = vsel %vm144_vm9, %v139_v9, 0.0 }
 0x119   :  { %v141_v10 = vpop.permute.xlu0 %140 }
 0x11a   :  { %v146_v12 = vsel %vm144_vm9, %v141_v10, 0.0 }
 0x11b   :  { %v147_v13 = vadd.f32 %v146_v12, %v145_v11 }
 0x11d   :  { %148 = vadd.xlane.f32.xlu0 %v147_v13 }
 0x184   :  { %v75_v18 = vpop.xlane.xlu2 %74 }
 0x185   :  { %v76_v19 = vrot.slane %v75_v18, 4 }
 0x187   :  { %v77_v21 = vadd.f32 %v76_v19, %v75_v18 }
 0x189   :  { %v78_v22 = vrot.slane %v77_v21, 2 }
 0x18b   :  { %v79_v24 = vadd.f32 %v78_v22, %v77_v21 }
 0x18d   :  { %v80_v25 = vrot.slane %v79_v24, 1 }
 0x18f   :  { %v81_v27 = vadd.f32 %v80_v25, %v79_v24 }
 0x190   :  { %v149_v28 = vpop.xlane.xlu0 %148 }
 0x191   :  { %v150_v29 = vrot.slane %v149_v28, 4  ;;  %186 = vpush %v81_v27 }
 0x192   :  { %188 = vpush %v95_v26 }
 0x193   :  { %v151_v30 = vadd.f32 %v150_v29, %v149_v28 }
 0x195   :  { %v152_v31 = vrot.slane %v151_v30, 2 }
 0x197   :  { %v153_v32 = vadd.f32 %v152_v31, %v151_v30 }
 0x199   :  { %v154_v33 = vrot.slane %v153_v32, 1 }
 0x19b   :  { %v155_v34 = vadd.f32 %v154_v33, %v153_v32 }
 0x19d   :  { %190 = vpush %v155_v34 }
 0x1c2   :  { %s187_s2 = spop %186 }
 0x1c3   :  { %84 = sst [smem:[#allocation2]] %s187_s2  ;;  %s189_s25 = spop %188 }
 0x1c4   :  { %98 = sst [smem:[#allocation2 + $0x1]] %s189_s25 }
 0x1ce   :  { %s191_s29 = spop %190 }
 0x1cf   :  { %158 = sst [smem:[#allocation2 + $0x2]] %s191_s29 }
 0x1d0   :  { %177 = dma.smem_to_vmem %s231_s30, 16, %s175_s28, [#allocation3]  }
 0x1d1   :  { %223 = dma.done.wait [#allocation3], 16  }
 0x1d2   :  { %224 = vsyncadd [#allocation3], 4294967280 }
 0x1d3   :  { %182 = sfence }
 0x1d4   :  { %183 = vsyncpa [#allocation3], 1 }

// kernel: _fused_losses.3
= control target key start
LH: loop header
LB: loop body
LE: loop exit
PB: predicated region body
PF: predicated region fallthrough
CT: control target
= control target key end

     0   :  { %9 = vsyncpa [#allocation3], 0  ;;  %s1092_s0 = inlined_call_operand.vmem [shape: f32[8], index: 0, kind: input, shape index: {}]   ;;  %s1093_s1 = inlined_call_operand.vmem [shape: f32[8,128], index: 1, kind: input, shape index: {}]   ;;  %s1094_s2 = inlined_call_operand.vmem [shape: f32[128,5], index: 2, kind: input, shape index: {}]   ;;  %s1095_s3 = inlined_call_operand.vmem [shape: s32[128,1], index: 3, kind: input, shape index: {}]   ;;  %s1096_s4 = inlined_call_operand.vmem [shape: f32[1,8], index: 4, kind: output, shape index: {}]  }
   0x1   :  { %10 = vsyncpa [#allocation4], 0  ;;  %s16_s17 = sshll.u32 %s1092_s0, 4  ;;  %s664_s18 = smov [#allocation2]   ;;  %s17_s17 = int_to_ptr.vmem [resolvable:$true] %s16_s17 }
   0x2   :  { %19 = dma.vmem_to_smem %s17_s17, 16, %s664_s18, [#allocation3]  }
   0x3   :  { %660 = dma.done.wait [#allocation3], 16  }
   0x4   :  { %661 = vsyncadd [#allocation3], 4294967280 }
   0x5   :  { %30 = sfence }
   0x6   :  { %v177_v0 = vld [vmem:[%s1095_s3 + $0x20] sm:$0xff]  ;;  %v175_v1 = vld [vmem:[%s1095_s3 + $0x10] sm:$0xff]  ;;  %v665_v3 = vmov 0   ;;  %v178_v4 = vld [vmem:[%s1095_s3 + $0x28] sm:$0xff]  ;;  %vm269_vm0 = vcmask 39936   ;;  %v35_v33 = vlaneseq  ;;  %s667_s28 = smov 0.0  }
   0x7   :  { %v173_v2 = vld [vmem:[%s1095_s3] sm:$0xff]  ;;  %631 = vset.pattern.permute.xlu2 %v665_v3  ;;  %630 = vset.pattern.permute.xlu1 %v665_v3  ;;  %v176_v5 = vld [vmem:[%s1095_s3 + $0x18] sm:$0xff]  ;;  %v174_v6 = vld [vmem:[%s1095_s3 + $0x8] sm:$0xff]  ;;  %558 = sst [smem:[#allocation5]] %s667_s28  ;;  %s572_s12 = sshll.u32 %s1096_s4, 4  ;;  %s573_s12 = int_to_ptr.vmem [resolvable:$true] %s572_s12 }
   0x8   :  { %629 = vset.pattern.permute.xlu0 %v665_v3  ;;  %202 = vperm.xlu2 %631, %v177_v0   ;;  %v181_v7 = vld [vmem:[%s1095_s3 + $0x40] sm:$0xff]  ;;  %v180_v8 = vld [vmem:[%s1095_s3 + $0x38] sm:$0xff]  ;;  %v179_v9 = vld [vmem:[%s1095_s3 + $0x30] sm:$0xff]  ;;  %v778_v34 = vand.u32 127, %v35_v33  ;;  %560 = sst [smem:[#allocation5 + $0x1]] %s667_s28  ;;  %s668_s15 = smov [#allocation5]  }
   0x9   :  { %196 = vperm.xlu1 %630, %v175_v1   ;;  %190 = vperm.xlu0 %629, %v173_v2   ;;  %v184_v10 = vld [vmem:[%s1095_s3 + $0x58] sm:$0xff]  ;;  %v183_v11 = vld [vmem:[%s1095_s3 + $0x50] sm:$0xff]  ;;  %v182_v12 = vld [vmem:[%s1095_s3 + $0x48] sm:$0xff]  ;;  %562 = sst [smem:[#allocation5 + $0x5]] %s667_s28 }
   0xa   :  { %v187_v13 = vld [vmem:[%s1095_s3 + $0x70] sm:$0xff]  ;;  %v186_v14 = vld [vmem:[%s1095_s3 + $0x68] sm:$0xff]  ;;  %v185_v15 = vld [vmem:[%s1095_s3 + $0x60] sm:$0xff]  ;;  %564 = sst [smem:[#allocation5 + $0x6]] %s667_s28 }
   0xb   :  { %v188_v16 = vld [vmem:[%s1095_s3 + $0x78] sm:$0xff]  ;;  %v158_v17 = vld [vmem:[%s1094_s2 + $0x8] sm:$0xff]  ;;  %v159_v21 = vld [vmem:[%s1094_s2 + $0x10] sm:$0xff]  ;;  %566 = sst [smem:[#allocation5 + $0x7]] %s667_s28 }
   0xc   :  { %v160_v18 = vld [vmem:[%s1094_s2 + $0x18] sm:$0xff]  ;;  %v321_v19 = vsel %vm269_vm0, %v158_v17, -inf  ;;  %v157_v22 = vld [vmem:[%s1094_s2] sm:$0xff]  ;;  %v163_v23 = vld [vmem:[%s1094_s2 + $0x30] sm:$0xff]  ;;  %v324_v24 = vsel %vm269_vm0, %v159_v21, -inf  ;;  %s583_s3 = sld [smem:[#allocation2 + $0x1]] }
   0xd   :  { %v327_v20 = vsel %vm269_vm0, %v160_v18, -inf  ;;  %v318_v25 = vsel %vm269_vm0, %v157_v22, -inf  ;;  %v336_v26 = vsel %vm269_vm0, %v163_v23, -inf  ;;  %v162_v27 = vld [vmem:[%s1094_s2 + $0x28] sm:$0xff]  ;;  %v161_v28 = vld [vmem:[%s1094_s2 + $0x20] sm:$0xff]  ;;  %v164_v31 = vld [vmem:[%s1094_s2 + $0x38] sm:$0xff] }
   0xe   :  { %v333_v29 = vsel %vm269_vm0, %v162_v27, -inf  ;;  %v330_v30 = vsel %vm269_vm0, %v161_v28, -inf  ;;  %v339_v32 = vsel %vm269_vm0, %v164_v31, -inf  ;;  %v165_v58 = vld [vmem:[%s1094_s2 + $0x40] sm:$0xff]  ;;  %v166_v59 = vld [vmem:[%s1094_s2 + $0x48] sm:$0xff]  ;;  %v167_v3 = vld [vmem:[%s1094_s2 + $0x50] sm:$0xff] }
   0xf   :  { %s584_s7 = sld [smem:[#allocation2 + $0x2]] }
  0x10   :  { %205 = vperm.xlu2 %631, %v178_v4   ;;  %v348_v4 = vsel %vm269_vm0, %v167_v3, -inf }
  0x11   :  { %199 = vperm.xlu1 %630, %v176_v5   ;;  %193 = vperm.xlu0 %629, %v174_v6   ;;  %v342_v5 = vsel %vm269_vm0, %v165_v58, -inf }
  0x18   :  { %214 = vperm.xlu2 %631, %v181_v7  }
  0x19   :  { %211 = vperm.xlu1 %630, %v180_v8   ;;  %208 = vperm.xlu0 %629, %v179_v9   ;;  %v345_v8 = vsel %vm269_vm0, %v166_v59, -inf }
  0x20   :  { %223 = vperm.xlu2 %631, %v184_v10   ;;  %v169_v10 = vld [vmem:[%s1094_s2 + $0x60] sm:$0xff] }
  0x21   :  { %220 = vperm.xlu1 %630, %v183_v11   ;;  %217 = vperm.xlu0 %629, %v182_v12   ;;  %v168_v11 = vld [vmem:[%s1094_s2 + $0x58] sm:$0xff] }
  0x28   :  { %232 = vperm.xlu2 %631, %v187_v13  }
  0x29   :  { %229 = vperm.xlu1 %630, %v186_v14   ;;  %226 = vperm.xlu0 %629, %v185_v15  }
  0x31   :  { %235 = vperm.xlu0 %629, %v188_v16  }
  0x51   :  { %322 = vmax.xlane.f32.xlu2 %v321_v19 }
  0x53   :  { %328 = vmax.xlane.f32.xlu1 %v327_v20  ;;  %v351_v20 = vsel %vm269_vm0, %v168_v11, -inf }
  0x59   :  { %325 = vmax.xlane.f32.xlu2 %v324_v24 }
  0x5b   :  { %319 = vmax.xlane.f32.xlu0 %v318_v25  ;;  %337 = vmax.xlane.f32.xlu1 %v336_v26  ;;  %v172_v25 = vld [vmem:[%s1094_s2 + $0x78] sm:$0xff]  ;;  %v171_v26 = vld [vmem:[%s1094_s2 + $0x70] sm:$0xff] }
  0x61   :  { %334 = vmax.xlane.f32.xlu2 %v333_v29 }
  0x62   :  { %v203_v37 = vpop.permute.xlu2 %202 }
  0x63   :  { %331 = vmax.xlane.f32.xlu0 %v330_v30  ;;  %vm241_vm5 = vcmp.eq.s32.totalorder %v778_v34, %v203_v37 }
  0x64   :  { %v257_v50 = vsel %vm241_vm5, %v161_v28, 0.0 }
  0x65   :  { %v282_v55 = vsel %vm269_vm0, %v257_v50, 0.0 }
  0x6a   :  { %v206_v46 = vpop.permute.xlu2 %205 }
  0x6b   :  { %340 = vmax.xlane.f32.xlu0 %v339_v32  ;;  %vm242_vm6 = vcmp.eq.s32.totalorder %v778_v34, %v206_v46 }
  0x6c   :  { %v258_v51 = vsel %vm242_vm6, %v162_v27, 0.0 }
  0x6d   :  { %v285_v56 = vsel %vm269_vm0, %v258_v51, 0.0 }
  0x72   :  { %v215_v57 = vpop.permute.xlu2 %214 }
  0x73   :  { %vm245_vm9 = vcmp.eq.s32.totalorder %v778_v34, %v215_v57 }
  0x74   :  { %v261_v62 = vsel %vm245_vm9, %v165_v58, 0.0  ;;  %vm511_vm9 = vcmask 7168  }
  0x75   :  { %v294_v2 = vsel %vm269_vm0, %v261_v62, 0.0 }
  0x7a   :  { %v224_v9 = vpop.permute.xlu2 %223 }
  0x7b   :  { %v197_v35 = vpop.permute.xlu1 %196  ;;  %v191_v36 = vpop.permute.xlu0 %190  ;;  %vm248_vm13 = vcmp.eq.s32.totalorder %v778_v34, %v224_v9 }
  0x7c   :  { %vm237_vm1 = vcmp.eq.s32.totalorder %v778_v34, %v191_v36  ;;  %vm239_vm2 = vcmp.eq.s32.totalorder %v778_v34, %v197_v35  ;;  %v264_v14 = vsel %vm248_vm13, %v168_v11, 0.0  ;;  %v360_v35 = vsel %vm269_vm0, %v171_v26, -inf }
  0x7d   :  { %v253_v38 = vsel %vm237_vm1, %v157_v22, 0.0  ;;  %v255_v40 = vsel %vm239_vm2, %v159_v21, 0.0  ;;  %v363_v36 = vsel %vm269_vm0, %v172_v25, -inf }
  0x7e   :  { %v270_v39 = vsel %vm269_vm0, %v253_v38, 0.0  ;;  %v276_v45 = vsel %vm269_vm0, %v255_v40, 0.0  ;;  %v853_v40 = vld [vmem:[%s1093_s1] sm:$0xff]  ;;  %s31_s1 = sld [smem:[#allocation2]] }
  0x7f   :  { %271 = vadd.xlane.f32.xlu1 %v270_v39 }
  0x82   :  { %v233_v24 = vpop.permute.xlu2 %232 }
  0x83   :  { %v200_v41 = vpop.permute.xlu1 %199  ;;  %v194_v42 = vpop.permute.xlu0 %193  ;;  %vm251_vm1 = vcmp.eq.s32.totalorder %v778_v34, %v233_v24 }
  0x84   :  { %vm240_vm3 = vcmp.eq.s32.totalorder %v778_v34, %v200_v41  ;;  %vm238_vm4 = vcmp.eq.s32.totalorder %v778_v34, %v194_v42  ;;  %v267_v29 = vsel %vm251_vm1, %v171_v26, 0.0  ;;  %v62_v41 = vmul.f32 0.5, %v853_v40 }
  0x85   :  { %v256_v43 = vsel %vm240_vm3, %v160_v18, 0.0  ;;  %v254_v44 = vsel %vm238_vm4, %v158_v17, 0.0  ;;  %v303_v17 = vsel %vm269_vm0, %v264_v14, 0.0  ;;  %v170_v18 = vld [vmem:[%s1094_s2 + $0x68] sm:$0xff]  ;;  %v312_v32 = vsel %vm269_vm0, %v267_v29, 0.0 }
  0x86   :  { %v279_v47 = vsel %vm269_vm0, %v256_v43, 0.0  ;;  %v273_v48 = vsel %vm269_vm0, %v254_v44, 0.0  ;;  %v357_v19 = vsel %vm269_vm0, %v170_v18, -inf  ;;  %v64_v42 = vrot.slane %v62_v41, 2 }
  0x87   :  { %280 = vadd.xlane.f32.xlu0 %v279_v47  ;;  %274 = vadd.xlane.f32.xlu2 %v273_v48 }
  0x88   :  { %277 = vadd.xlane.f32.xlu1 %v276_v45  ;;  %v66_v45 = vsub.f32 %v853_v40, %v64_v42  ;;  %v67_v46 = vadd.f32 %v64_v42, %v853_v40 }
  0x8a   :  { %v72_v48 = vrot.slane %v66_v45, 4 }
  0x8b   :  { %v209_v49 = vpop.permute.xlu0 %208  ;;  %v212_v52 = vpop.permute.xlu1 %211 }
  0x8c   :  { %vm243_vm7 = vcmp.eq.s32.totalorder %v778_v34, %v209_v49  ;;  %vm244_vm8 = vcmp.eq.s32.totalorder %v778_v34, %v212_v52  ;;  %v76_v49 = vrot.slane %v67_v46, 4  ;;  %v74_v50 = vmax.f32 %v66_v45, %v72_v48 }
  0x8d   :  { %v259_v53 = vsel %vm243_vm7, %v163_v23, 0.0  ;;  %v260_v61 = vsel %vm244_vm8, %v164_v31, 0.0  ;;  %v354_v23 = vsel %vm269_vm0, %v169_v10, -inf }
  0x8e   :  { %v288_v54 = vsel %vm269_vm0, %v259_v53, 0.0  ;;  %v291_v1 = vsel %vm269_vm0, %v260_v61, 0.0  ;;  %v78_v51 = vmin.f32 %v67_v46, %v76_v49  ;;  %v68_v53 = vrot.slane %v853_v40, 1 }
  0x8f   :  { %289 = vadd.xlane.f32.xlu0 %v288_v54  ;;  %283 = vadd.xlane.f32.xlu2 %v282_v55 }
  0x90   :  { %286 = vadd.xlane.f32.xlu1 %v285_v56  ;;  %v79_v52 = vsub.f32 %v78_v51, %v74_v50  ;;  %v70_v57 = vmul.f32 %v68_v53, %v853_v40  ;;  %v43_v51 = vrot.slane %v853_v40, 4 }
  0x92   :  { %v80_v54 = vmax.f32 %v79_v52, 0.0 }
  0x93   :  { %v218_v60 = vpop.permute.xlu0 %217  ;;  %v221_v6 = vpop.permute.xlu1 %220 }
  0x94   :  { %vm246_vm10 = vcmp.eq.s32.totalorder %v778_v34, %v218_v60  ;;  %vm247_vm11 = vcmp.eq.s32.totalorder %v778_v34, %v221_v6  ;;  %v82_v58 = vrot.slane %v80_v54, 1  ;;  %v113_v60 = vmax.f32 %v67_v46, %v76_v49 }
  0x95   :  { %v262_v63 = vsel %vm246_vm10, %v166_v59, 0.0  ;;  %v263_v13 = vsel %vm247_vm11, %v167_v3, 0.0  ;;  %v112_v59 = vmin.f32 %v66_v45, %v72_v48  ;;  %v876_v6 = vshrl.u32 %v35_v33, 7 }
  0x96   :  { %v297_v0 = vsel %vm269_vm0, %v262_v63, 0.0  ;;  %v300_v16 = vsel %vm269_vm0, %v263_v13, 0.0  ;;  %v870_v62 = vmul.f32 %v82_v58, %v80_v54  ;;  %v86_v63 = vrot.slane %v70_v57, 4 }
  0x97   :  { %298 = vadd.xlane.f32.xlu0 %v297_v0  ;;  %292 = vadd.xlane.f32.xlu2 %v291_v1  ;;  %v114_v0 = vsub.f32 %v113_v60, %v112_v59  ;;  %v368_v11 = vadd.s32 8, %v876_v6  ;;  %v370_v13 = vadd.s32 24, %v876_v6  ;;  %v369_v14 = vadd.s32 16, %v876_v6 }
  0x98   :  { %295 = vadd.xlane.f32.xlu1 %v294_v2  ;;  %v88_v1 = vadd.f32 %v86_v63, %v70_v57  ;;  %v90_v2 = vrot.slane %v870_v62, 6  ;;  %v371_v33 = vadd.s32 32, %v876_v6  ;;  %v372_v24 = vadd.s32 40, %v876_v6 }
  0x99   :  { %v115_v3 = vmax.f32 %v114_v0, 0.0 }
  0x9a   :  { %v387_v26 = vcvt.s32.f32 %v371_v33  ;;  %v388_v29 = vcvt.s32.f32 %v372_v24 }
  0x9b   :  { %v227_v7 = vpop.permute.xlu0 %226  ;;  %v230_v21 = vpop.permute.xlu1 %229 }
  0x9c   :  { %vm249_vm12 = vcmp.eq.s32.totalorder %v778_v34, %v227_v7  ;;  %vm250_vm14 = vcmp.eq.s32.totalorder %v778_v34, %v230_v21  ;;  %v386_v21 = vcvt.s32.f32 %v370_v13 }
  0x9d   :  { %v265_v12 = vsel %vm249_vm12, %v169_v10, 0.0  ;;  %v266_v28 = vsel %vm250_vm14, %v170_v18, 0.0  ;;  %v384_v18 = vcvt.s32.f32 %v368_v11 }
  0x9e   :  { %v306_v15 = vsel %vm269_vm0, %v265_v12, 0.0  ;;  %v309_v31 = vsel %vm269_vm0, %v266_v28, 0.0 }
  0x9f   :  { %349 = vmax.xlane.f32.xlu0 %v348_v4  ;;  %343 = vmax.xlane.f32.xlu2 %v342_v5  ;;  %v873_v4 = vsub.f32 %v88_v1, %v90_v2  ;;  %v117_v5 = vrot.slane %v115_v3, 1  ;;  %v376_v1 = vadd.s32 72, %v876_v6 }
  0xa0   :  { %346 = vmax.xlane.f32.xlu1 %v345_v8 }
  0xa1   :  { %v93_v9 = vadd.f32 1e-12, %v873_v4  ;;  %v881_v10 = vmul.f32 %v117_v5, %v115_v3 }
  0xa3   :  { %v236_v22 = vpop.permute.xlu0 %235 }
  0xa4   :  { %vm252_vm15 = vcmp.eq.s32.totalorder %v778_v34, %v236_v22  ;;  %v385_v22 = vcvt.s32.f32 %v369_v14 }
  0xa5   :  { %v268_v27 = vsel %vm252_vm15, %v172_v25, 0.0 }
  0xa6   :  { %v315_v30 = vsel %vm269_vm0, %v268_v27, 0.0 }
  0xa7   :  { %307 = vadd.xlane.f32.xlu0 %v306_v15  ;;  %301 = vadd.xlane.f32.xlu2 %v300_v16  ;;  %v373_v15 = vadd.s32 48, %v876_v6  ;;  %v890_v16 = vrot.slane %v93_v9, 2 }
  0xa8   :  { %304 = vadd.xlane.f32.xlu1 %v303_v17  ;;  %v893_v17 = vadd.f32 1e-12, %v881_v10 }
  0xa9   :  { %632 = vrcp.f32 %v890_v16  ;;  %vm102_vm12 = vweird.f32 %v890_v16  ;;  %v108_v54 = vand.u32 2147483648, %v890_v16  ;;  %v106_v63 = vand.u32 2147483647, %v890_v16 }
  0xaa   :  { %634 = vrcp.f32 %v893_v17  ;;  %v136_v9 = vand.u32 2147483648, %v893_v17 }
  0xab   :  { %v109_v14 = vor.u32 1.1754944e-38, %v108_v54  ;;  %v45_v54 = vsub.f32 %v853_v40, %v43_v51 }
  0xaf   :  { %358 = vmax.xlane.f32.xlu0 %v357_v19  ;;  %352 = vmax.xlane.f32.xlu2 %v351_v20  ;;  %v383_v19 = vcvt.s32.f32 %v876_v6  ;;  %v896_v20 = vstv %s31_s1 }
  0xb0   :  { %355 = vmax.xlane.f32.xlu1 %v354_v23  ;;  %v389_v23 = vcvt.s32.f32 %v373_v15  ;;  %vm400_vm0 = vcmp.lt.f32.partialorder %v384_v18, %v896_v20  ;;  %vm402_vm4 = vcmp.lt.f32.partialorder %v386_v21, %v896_v20  ;;  %vm401_vm5 = vcmp.lt.f32.partialorder %v385_v22, %v896_v20 }
  0xb1   :  { %vm399_vm3 = vcmp.lt.f32.partialorder %v383_v19, %v896_v20  ;;  %vm403_vm8 = vcmp.lt.f32.partialorder %v387_v26, %v896_v20  ;;  %vm932_vm11 = vcmp.lt.f32.partialorder %v388_v29, %v896_v20  ;;  %v37_v29 = vcvt.s32.f32 %v778_v34 }
  0xb2   :  { %vm405_vm6 = vcmp.lt.f32.partialorder %v389_v23, %v896_v20  ;;  %v380_v18 = vadd.s32 104, %v876_v6 }
  0xb7   :  { %316 = vadd.xlane.f32.xlu0 %v315_v30  ;;  %310 = vadd.xlane.f32.xlu2 %v309_v31  ;;  %v666_v30 = vmov 0.0  }
  0xb8   :  { %313 = vadd.xlane.f32.xlu1 %v312_v32  ;;  %v587_v31 = vsel %vm400_vm0, 1.0, %v666_v30  ;;  %v589_v42 = vsel %vm402_vm4, 1.0, %v666_v30  ;;  %v588_v45 = vsel %vm401_vm5, 1.0, %v666_v30  ;;  %v590_v50 = vsel %vm403_vm8, 1.0, %v666_v30 }
  0xb9   :  { %vm965_vm0 = vcmp.eq.f32.partialorder %v106_v63, 8.507059e+37  ;;  %vm39_vm8 = vcmp.lt.f32.partialorder %v37_v29, %v896_v20 }
  0xbf   :  { %361 = vmax.xlane.f32.xlu2 %v360_v35  ;;  %v633_v35 = vpop.eup %632 }
  0xc0   :  { %364 = vmax.xlane.f32.xlu1 %v363_v36  ;;  %v586_v36 = vsel %vm399_vm3, 1.0, %v666_v30  ;;  %v919_v41 = vpop.eup %634  ;;  %v98_v46 = vmul.f32 %v633_v35, %v890_v16  ;;  %vm103_vm13 = vweird.f32 %v633_v35 }
  0xc1   :  { %v126_v57 = vmul.f32 %v919_v41, %v893_v17  ;;  %vm960_vm1 = vmor %vm102_vm12, %vm103_vm13  ;;  %vm131_vm3 = vweird.f32 %v919_v41 }
  0xc2   :  { %v99_v53 = vsub.f32 1.0, %v98_v46 }
  0xc3   :  { %v127_v15 = vsub.f32 1.0, %v126_v57 }
  0xc4   :  { %v844_v37 = vpop.xlane.xlu2 %322  ;;  %v100_v2 = vmul.f32 %v633_v35, %v99_v53  ;;  %v377_v53 = vadd.s32 80, %v876_v6 }
  0xc5   :  { %v128_v23 = vmul.f32 %v919_v41, %v127_v15 }
  0xc6   :  { %v848_v39 = vpop.xlane.xlu1 %328  ;;  %v101_v11 = vadd.f32 %v633_v35, %v100_v2 }
  0xc8   :  { %v105_v19 = vsel %vm960_vm1, %v633_v35, %v101_v11  ;;  %vm143_vm1 = vcmask 1040384   ;;  %v379_v11 = vadd.s32 96, %v876_v6 }
  0xcc   :  { %v856_v43 = vpop.xlane.xlu2 %325 }
  0xce   :  { %v846_v38 = vpop.xlane.xlu0 %319  ;;  %v862_v47 = vpop.xlane.xlu1 %337 }
  0xd4   :  { %v865_v55 = vpop.xlane.xlu2 %334 }
  0xd6   :  { %v858_v44 = vpop.xlane.xlu0 %331 }
  0xde   :  { %v867_v56 = vpop.xlane.xlu0 %340 }
  0xf2   :  { %v272_v61 = vpop.xlane.xlu1 %271 }
  0xf3   :  { %vm447_vm7 = vcmp.ge.f32.partialorder %v272_v61, %v846_v38  ;;  %v924_v38 = vsel %vm405_vm6, 1.0, %v666_v30  ;;  %v375_v61 = vadd.s32 64, %v876_v6 }
  0xf4   :  { %v602_v48 = vsel %vm447_vm7, 1.0, %v666_v30 }
  0xf5   :  { %v495_v0 = vmul.f32 %v602_v48, %v586_v36  ;;  %v391_v22 = vcvt.s32.f32 %v375_v61 }
  0xf7   :  { %v512_v33 = vsel %vm511_vm9, %v495_v0, 0.0  ;;  %v378_v0 = vadd.s32 88, %v876_v6 }
  0xf9   :  { %v394_v15 = vcvt.s32.f32 %v378_v0 }
  0xfa   :  { %v878_v7 = vpop.xlane.xlu0 %280  ;;  %v275_v8 = vpop.xlane.xlu2 %274 }
  0xfb   :  { %v884_v12 = vpop.xlane.xlu1 %277  ;;  %vm448_vm2 = vcmp.ge.f32.partialorder %v275_v8, %v844_v37  ;;  %v374_v37 = vadd.s32 56, %v876_v6  ;;  %vm450_vm14 = vcmp.ge.f32.partialorder %v878_v7, %v848_v39  ;;  %v137_v7 = vor.u32 1.1754944e-38, %v136_v9 }
  0xfc   :  { %v603_v32 = vsel %vm448_vm2, 1.0, %v666_v30  ;;  %vm449_vm10 = vcmp.ge.f32.partialorder %v884_v12, %v856_v43  ;;  %v121_v43 = vrot.slane %v873_v4, 2  ;;  %vm130_vm2 = vweird.f32 %v893_v17 }
  0xfd   :  { %v496_v49 = vmul.f32 %v603_v32, %v587_v31  ;;  %v390_v59 = vcvt.s32.f32 %v374_v37  ;;  %v604_v5 = vsel %vm449_vm10, 1.0, %v666_v30  ;;  %v134_v12 = vand.u32 2147483647, %v893_v17  ;;  %vm995_vm5 = vmor %vm130_vm2, %vm131_vm3 }
  0xfe   :  { %v497_v16 = vmul.f32 %v604_v5, %v588_v45  ;;  %v605_v4 = vsel %vm450_vm14, 1.0, %v666_v30  ;;  %v110_v31 = vsel %vm965_vm0, %v109_v14, %v105_v19  ;;  %v392_v32 = vcvt.s32.f32 %v376_v1 }
  0xff   :  { %v513_v3 = vsel %vm511_vm9, %v496_v49, 0.0  ;;  %vm975_vm4 = vcmp.lt.f32.partialorder %v390_v59, %v896_v20  ;;  %v123_v36 = vsub.f32 %v881_v10, %v121_v43  ;;  %vm135_vm6 = vcmp.eq.f32.partialorder %v134_v12, 8.507059e+37 }
 0x100   :  { %v514_v21 = vadd.f32 %v513_v3, %v512_v33  ;;  %v515_v34 = vsel %vm511_vm9, %v497_v16, 0.0  ;;  %v591_v17 = vsel %vm932_vm11, 1.0, %v666_v30  ;;  %v593_v37 = vsel %vm975_vm4, 1.0, %v666_v30 }
 0x101   :  { %v111_v10 = vmul.f32 %v110_v31, %v870_v62  ;;  %vm1023_vm11 = vcmp.lt.f32.partialorder %v391_v22, %v896_v20  ;;  %vm1028_vm12 = vcmp.lt.f32.partialorder %v392_v32, %v896_v20  ;;  %v46_v1 = vand.u32 2147483647, %v45_v54 }
 0x102   :  { %v900_v25 = vpop.xlane.xlu0 %289  ;;  %v902_v27 = vpop.xlane.xlu2 %283  ;;  %v516_v48 = vadd.f32 %v515_v34, %v514_v21  ;;  %v393_v9 = vcvt.s32.f32 %v377_v53  ;;  %vm410_vm4 = vcmp.lt.f32.partialorder %v394_v15, %v896_v20  ;;  %v396_v31 = vcvt.s32.f32 %v380_v18 }
 0x103   :  { %v907_v28 = vpop.xlane.xlu1 %286  ;;  %vm451_vm15 = vcmp.ge.f32.partialorder %v902_v27, %v858_v44  ;;  %v129_v44 = vadd.f32 %v919_v41, %v128_v23  ;;  %v498_v27 = vmul.f32 %v605_v4, %v589_v42  ;;  %vm453_vm10 = vcmp.ge.f32.partialorder %v900_v25, %v862_v47 }
 0x104   :  { %v606_v24 = vsel %vm451_vm15, 1.0, %v666_v30  ;;  %vm452_vm7 = vcmp.ge.f32.partialorder %v907_v28, %v865_v55  ;;  %v585_v25 = vsel %vm39_vm8, 1.0, %v666_v30  ;;  %v608_v59 = vsel %vm453_vm10, 1.0, %v666_v30 }
 0x105   :  { %v499_v45 = vmul.f32 %v606_v24, %v590_v50  ;;  %v133_v42 = vsel %vm995_vm5, %v919_v41, %v129_v44  ;;  %v517_v41 = vsel %vm511_vm9, %v498_v27, 0.0  ;;  %v607_v50 = vsel %vm452_vm7, 1.0, %v666_v30 }
 0x106   :  { %v138_v49 = vsel %vm135_vm6, %v137_v7, %v133_v42  ;;  %v518_v61 = vadd.f32 %v517_v41, %v516_v48  ;;  %v500_v2 = vmul.f32 %v607_v50, %v591_v17  ;;  %vm48_vm15 = vcmask 1043456  }
 0x107   :  { %v139_v28 = vmul.f32 %v138_v49, %v123_v36  ;;  %v519_v47 = vsel %vm511_vm9, %v499_v45, 0.0  ;;  %v501_v14 = vmul.f32 %v608_v59, %v924_v38  ;;  %vm409_vm2 = vcmp.lt.f32.partialorder %v393_v9, %v896_v20 }
 0x108   :  { %v520_v5 = vadd.f32 %v519_v47, %v518_v61  ;;  %v521_v12 = vsel %vm511_vm9, %v500_v2, 0.0  ;;  %v595_v38 = vsel %vm1028_vm12, 1.0, %v666_v30  ;;  %v395_v23 = vcvt.s32.f32 %v379_v11 }
 0x109   :  { %v140_v57 = vsub.f32 %v111_v10, %v139_v28  ;;  %v523_v24 = vsel %vm511_vm9, %v501_v14, 0.0  ;;  %v596_v7 = vsel %vm409_vm2, 1.0, %v666_v30  ;;  %v597_v44 = vsel %vm410_vm4, 1.0, %v666_v30 }
 0x10a   :  { %v936_v52 = vpop.xlane.xlu2 %292  ;;  %v942_v58 = vpop.xlane.xlu0 %298  ;;  %v522_v4 = vadd.f32 %v521_v12, %v520_v5  ;;  %vm411_vm6 = vcmp.lt.f32.partialorder %v395_v23, %v896_v20  ;;  %vm412_vm7 = vcmp.lt.f32.partialorder %v396_v31, %v896_v20 }
 0x10b   :  { %v944_v60 = vpop.xlane.xlu1 %295  ;;  %vm454_vm13 = vcmp.ge.f32.partialorder %v936_v52, %v867_v56  ;;  %v141_v40 = vsub.f32 1.0, %v140_v57  ;;  %v47_v56 = vmul.f32 %v585_v25, %v46_v1  ;;  %v594_v52 = vsel %vm1023_vm11, 1.0, %v666_v30 }
 0x10c   :  { %v609_v8 = vsel %vm454_vm13, 1.0, %v666_v30  ;;  %v598_v48 = vsel %vm411_vm6, 1.0, %v666_v30  ;;  %v599_v51 = vsel %vm412_vm7, 1.0, %v666_v30 }
 0x10d   :  { %v142_v13 = vmul.f32 %v585_v25, %v141_v40  ;;  %v49_v43 = vsel %vm48_vm15, %v47_v56, 0.0  ;;  %v502_v33 = vmul.f32 %v609_v8, %v593_v37  ;;  %v381_v37 = vadd.s32 112, %v876_v6 }
 0x10e   :  { %50 = vadd.xlane.f32.xlu2 %v49_v43 }
 0x10f   :  { %v144_v19 = vsel %vm143_vm1, %v142_v13, 0.0  ;;  %v397_v41 = vcvt.s32.f32 %v381_v37 }
 0x110   :  { %145 = vadd.xlane.f32.xlu0 %v144_v19 }
 0x111   :  { %vm413_vm11 = vcmp.lt.f32.partialorder %v397_v41, %v896_v20 }
 0x112   :  { %v344_v26 = vpop.xlane.xlu2 %343  ;;  %v1012_v46 = vpop.xlane.xlu0 %349  ;;  %v600_v0 = vsel %vm413_vm11, 1.0, %v666_v30 }
 0x113   :  { %v999_v35 = vpop.xlane.xlu1 %346  ;;  %vm455_vm14 = vcmp.ge.f32.partialorder %v944_v60, %v344_v26  ;;  %v525_v26 = vsel %vm511_vm9, %v502_v33, 0.0 }
 0x114   :  { %v610_v60 = vsel %vm455_vm14, 1.0, %v666_v30  ;;  %vm456_vm0 = vcmp.ge.f32.partialorder %v942_v58, %v999_v35  ;;  %v524_v58 = vadd.f32 %v523_v24, %v522_v4 }
 0x115   :  { %v503_v21 = vmul.f32 %v610_v60, %v594_v52  ;;  %v611_v39 = vsel %vm456_vm0, 1.0, %v666_v30 }
 0x116   :  { %v526_v36 = vadd.f32 %v525_v26, %v524_v58  ;;  %v504_v34 = vmul.f32 %v611_v39, %v595_v38 }
 0x117   :  { %v527_v35 = vsel %vm511_vm9, %v503_v21, 0.0 }
 0x118   :  { %v528_v45 = vadd.f32 %v527_v35, %v526_v36  ;;  %v529_v55 = vsel %vm511_vm9, %v504_v34, 0.0 }
 0x11a   :  { %v302_v63 = vpop.xlane.xlu2 %301  ;;  %v308_v16 = vpop.xlane.xlu0 %307  ;;  %v530_v50 = vadd.f32 %v529_v55, %v528_v45 }
 0x11b   :  { %v305_v3 = vpop.xlane.xlu1 %304  ;;  %vm457_vm3 = vcmp.ge.f32.partialorder %v302_v63, %v1012_v46  ;;  %v382_v46 = vadd.s32 120, %v876_v6 }
 0x11c   :  { %v612_v32 = vsel %vm457_vm3, 1.0, %v666_v30 }
 0x11d   :  { %v505_v17 = vmul.f32 %v612_v32, %v596_v7  ;;  %v398_v54 = vcvt.s32.f32 %v382_v46 }
 0x11f   :  { %v531_v62 = vsel %vm511_vm9, %v505_v17, 0.0  ;;  %vm414_vm12 = vcmp.lt.f32.partialorder %v398_v54, %v896_v20 }
 0x120   :  { %v532_v25 = vadd.f32 %v531_v62, %v530_v50  ;;  %v601_v5 = vsel %vm414_vm12, 1.0, %v666_v30 }
 0x122   :  { %v353_v22 = vpop.xlane.xlu2 %352  ;;  %v359_v10 = vpop.xlane.xlu0 %358 }
 0x123   :  { %vm458_vm5 = vcmp.ge.f32.partialorder %v305_v3, %v353_v22  ;;  %v356_v29 = vpop.xlane.xlu1 %355 }
 0x124   :  { %v613_v27 = vsel %vm458_vm5, 1.0, %v666_v30  ;;  %vm459_vm8 = vcmp.ge.f32.partialorder %v308_v16, %v356_v29 }
 0x125   :  { %v506_v42 = vmul.f32 %v613_v27, %v597_v44  ;;  %v614_v53 = vsel %vm459_vm8, 1.0, %v666_v30 }
 0x126   :  { %v507_v57 = vmul.f32 %v614_v53, %v598_v48 }
 0x127   :  { %v533_v47 = vsel %vm511_vm9, %v506_v42, 0.0 }
 0x128   :  { %v534_v61 = vadd.f32 %v533_v47, %v532_v25  ;;  %v535_v1 = vsel %vm511_vm9, %v507_v57, 0.0 }
 0x12a   :  { %v311_v49 = vpop.xlane.xlu2 %310  ;;  %v317_v2 = vpop.xlane.xlu0 %316  ;;  %v536_v8 = vadd.f32 %v535_v1, %v534_v61 }
 0x12b   :  { %vm460_vm10 = vcmp.ge.f32.partialorder %v311_v49, %v359_v10  ;;  %v314_v28 = vpop.xlane.xlu1 %313 }
 0x12c   :  { %v615_v6 = vsel %vm460_vm10, 1.0, %v666_v30 }
 0x12d   :  { %v508_v59 = vmul.f32 %v615_v6, %v599_v51 }
 0x12f   :  { %v537_v3 = vsel %vm511_vm9, %v508_v59, 0.0 }
 0x130   :  { %v538_v11 = vadd.f32 %v537_v3, %v536_v8 }
 0x132   :  { %v362_v63 = vpop.xlane.xlu2 %361 }
 0x133   :  { %vm461_vm13 = vcmp.ge.f32.partialorder %v314_v28, %v362_v63  ;;  %v365_v40 = vpop.xlane.xlu1 %364 }
 0x134   :  { %v616_v56 = vsel %vm461_vm13, 1.0, %v666_v30  ;;  %vm462_vm14 = vcmp.ge.f32.partialorder %v317_v2, %v365_v40 }
 0x135   :  { %v509_v52 = vmul.f32 %v616_v56, %v600_v0  ;;  %v617_v9 = vsel %vm462_vm14, 1.0, %v666_v30 }
 0x136   :  { %v510_v20 = vmul.f32 %v617_v9, %v601_v5 }
 0x137   :  { %v539_v13 = vsel %vm511_vm9, %v509_v52, 0.0 }
 0x138   :  { %v540_v14 = vadd.f32 %v539_v13, %v538_v11  ;;  %v541_v60 = vsel %vm511_vm9, %v510_v20, 0.0 }
 0x13a   :  { %v542_v15 = vadd.f32 %v541_v60, %v540_v14 }
 0x13c   :  { %543 = vadd.xlane.f32.xlu1 %v542_v15 }
 0x181   :  { %v51_v43 = vpop.xlane.xlu2 %50 }
 0x182   :  { %v52_v33 = vrot.slane %v51_v43, 4 }
 0x183   :  { %v146_v12 = vpop.xlane.xlu0 %145 }
 0x184   :  { %v147_v16 = vrot.slane %v146_v12, 4  ;;  %v53_v30 = vadd.f32 %v52_v33, %v51_v43 }
 0x186   :  { %v148_v18 = vadd.f32 %v147_v16, %v146_v12  ;;  %v54_v19 = vrot.slane %v53_v30, 2 }
 0x188   :  { %v149_v4 = vrot.slane %v148_v18, 2  ;;  %v55_v21 = vadd.f32 %v54_v19, %v53_v30 }
 0x18a   :  { %v150_v38 = vadd.f32 %v149_v4, %v148_v18  ;;  %v56_v22 = vrot.slane %v55_v21, 1 }
 0x18c   :  { %v151_v23 = vrot.slane %v150_v38, 1  ;;  %v57_v24 = vadd.f32 %v56_v22, %v55_v21 }
 0x18e   :  { %v152_v26 = vadd.f32 %v151_v23, %v150_v38  ;;  %618 = vpush %v57_v24 }
 0x190   :  { %620 = vpush %v152_v26 }
 0x1af   :  { %v544_v29 = vpop.xlane.xlu1 %543 }
 0x1b0   :  { %v545_v31 = vrot.slane %v544_v29, 4 }
 0x1b2   :  { %v546_v58 = vadd.f32 %v545_v31, %v544_v29 }
 0x1b4   :  { %v547_v39 = vrot.slane %v546_v58, 2 }
 0x1b6   :  { %v548_v7 = vadd.f32 %v547_v39, %v546_v58 }
 0x1b8   :  { %v549_v32 = vrot.slane %v548_v7, 1 }
 0x1ba   :  { %v550_v35 = vadd.f32 %v549_v32, %v548_v7 }
 0x1bc   :  { %622 = vpush %v550_v35 }
 0x1bf   :  { %s619_s29 = spop %618 }
 0x1c0   :  { %s59_s30 = smul.f32 %s619_s29, %s583_s3 }
 0x1c1   :  { %s621_s5 = spop %620 }
 0x1c2   :  { %s154_s6 = smul.f32 %s621_s5, %s583_s3  ;;  %61 = sst [smem:[#allocation5 + $0x2]] %s59_s30 }
 0x1c4   :  { %156 = sst [smem:[#allocation5 + $0x3]] %s154_s6 }
 0x1ed   :  { %s623_s8 = spop %622 }
 0x1ee   :  { %s552_s9 = smul.f32 100.0, %s623_s8 }
 0x1f0   :  { %s553_s13 = smul.f32 %s584_s7, %s552_s9 }
 0x1f2   :  { %s554_s14 = ssub.f32 100.0, %s553_s13 }
 0x1f4   :  { %556 = sst [smem:[#allocation5 + $0x4]] %s554_s14 }
 0x1f5   :  { %575 = dma.smem_to_vmem %s668_s15, 16, %s573_s12, [#allocation4]  }
 0x1f6   :  { %662 = dma.done.wait [#allocation4], 16  }
 0x1f7   :  { %663 = vsyncadd [#allocation4], 4294967280 }
 0x1f8   :  { %580 = sfence }
 0x1f9   :  { %581 = vsyncpa [#allocation3], 1 }
 0x1fa   :  { %582 = vsyncpa [#allocation4], 1 }

</bundles_post_ra>
